<compile_context>
chip_gen: v6e
topology: v6e:2x2x1
jax: 0.10.0
libtpu: 0.0.40
codegen_flags: <defaults>
</compile_context>

<pallas_src>
import jax
import jax.numpy as jnp
from jax.experimental import pallas as pl
from jax.experimental.pallas import tpu as pltpu

ALPHA = 0.7          # ComboLoss mixing weight (module __init__ arg)
DICE_EPS = 1e-7      # smp DiceLoss default eps
# GAMMA = 2.0 is the smp FocalLoss default, hard-coded as a square below.


def _vreg_reduce(v, sub_r, lane_r):
    """(SUB, LANE) -> (sub_r, lane_r) by summing vreg-aligned blocks (pure VPU)."""
    sub, lane = v.shape
    acc = None
    for i in range(sub // sub_r):
        for j in range(lane // lane_r):
            blk = v[i * sub_r:(i + 1) * sub_r, j * lane_r:(j + 1) * lane_r]
            acc = blk if acc is None else acc + blk
    return acc


def _collapse(a):
    """(C, sub_r, lane_r) -> (C, 1); one XLU reduce per class, finalize only."""
    return jnp.sum(jnp.sum(a, axis=2), axis=1, keepdims=True)


def _make_kernel(C, sub_r, lane_r, focal_approx_recip):
    def kernel(logits_ref, labels_ref, out_ref,
               inter_acc, pred_acc, true_acc, focal_acc):
        # logits_ref: (C, SUB, LANE); labels_ref: (SUB, LANE); out_ref: (4, C, 1)
        t_idx = pl.program_id(2)

        @pl.when(t_idx == 0)
        def _init():
            inter_acc[...] = jnp.zeros_like(inter_acc)
            pred_acc[...] = jnp.zeros_like(pred_acc)
            true_acc[...] = jnp.zeros_like(true_acc)
            focal_acc[...] = jnp.zeros_like(focal_acc)

        y = labels_ref[...]                                    # (SUB, LANE) int32
        xs = [logits_ref[c].astype(jnp.float32) for c in range(C)]

        # Softmax over classes: class axis statically unrolled -> VPU max/adds,
        # no cross-sublane XLU reduction.
        m = xs[0]
        for c in range(1, C):
            m = jnp.maximum(m, xs[c])
        es = [jnp.exp(xc - m) for xc in xs]
        den = es[0]
        for c in range(1, C):
            den = den + es[c]
        inv_den = pl.reciprocal(den)                           # exact

        for c in range(C):
            xc = xs[c]
            p_c = es[c] * inv_den                              # softmax prob
            t_bool = y == c
            t_c = t_bool.astype(jnp.float32)

            # Focal (gamma=2): BCE-with-logits vs one-hot target.
            #   logpt = max(x,0) - x*t + log1p(exp(-|x|))
            #   1-pt  = (u if (x>=0)==(t==1) else 1) / (1+u),  u = exp(-|x|)
            u = jnp.exp(-jnp.abs(xc))
            logpt = jnp.maximum(xc, 0.0) - xc * t_c + jnp.log1p(u)
            pos = xc >= 0.0
            num = jnp.where(t_bool,
                            jnp.where(pos, u, 1.0),
                            jnp.where(pos, 1.0, u))
            one_minus_pt = num * pl.reciprocal(1.0 + u, approx=focal_approx_recip)
            focal_c = (one_minus_pt * one_minus_pt) * logpt

            # Per-step reduction to one vreg per class per stat, then '+=' into
            # tiny scratch (no block_cols-wide accumulators).
            inter_acc[c] += _vreg_reduce(p_c * t_c, sub_r, lane_r)
            pred_acc[c] += _vreg_reduce(p_c, sub_r, lane_r)
            true_acc[c] += _vreg_reduce(t_c, sub_r, lane_r)
            focal_acc[c] += _vreg_reduce(focal_c, sub_r, lane_r)

        @pl.when(t_idx == pl.num_programs(2) - 1)
        def _finalize():
            out_ref[0] = _collapse(inter_acc[...])
            out_ref[1] = _collapse(pred_acc[...])
            out_ref[2] = _collapse(true_acc[...])
            out_ref[3] = _collapse(focal_acc[...])

    return kernel


def _pick_tiling(HW, C, N, target_elems):
    """Choose (num_chunks, sub, lane) with HW == num_chunks * steps * sub * lane."""
    if HW % 128 != 0:
        # TODO(synk): pad + mask the spatial axis instead of one giant block
        # (padded lanes must be excluded from pred/focal sums).
        return 1, 1, HW
    per_class = max(1024, target_elems // max(C, 1))
    if HW % 1024 == 0:
        lane_cap = min(per_class // 8, HW // 8)   # leave room for 8 sublane rows
    else:
        lane_cap = min(per_class, HW)
    lane_cap = max(128, lane_cap)
    lane_cap -= lane_cap % 128
    lane = 128
    cand = 256
    while cand <= lane_cap:
        if HW % cand == 0:
            lane = cand
        cand += 128
    rows = HW // lane
    num_chunks = 2 if (N == 1 and rows % 2 == 0) else 1   # v7x: 2 TCs even at N=1
    rows_pc = rows // num_chunks
    if rows_pc % 8 == 0:
        sub = 8
        g = 16
        while g <= rows_pc and g * lane <= per_class:
            if rows_pc % g == 0:
                sub = g
            g += 8
    else:
        sub = rows_pc          # equals full dim extent -> legal block shape
    return num_chunks, sub, lane


def combo_loss(y_pred, y_true, alpha=ALPHA, *,
               target_block_elems=131072, focal_approx_recip=True):
    """y_pred: (N, C, H, W) float logits (f32 or bf16, NCHW like PyTorch);
       y_true: (N, H, W) integer class indices.  Returns scalar f32 loss."""
    N, C, H, W = y_pred.shape
    HW = H * W
    num_chunks, sub, lane = _pick_tiling(HW, C, N, target_block_elems)
    rows_pc = HW // (num_chunks * lane)
    steps = rows_pc // sub
    assert num_chunks * rows_pc * lane == HW and rows_pc % sub == 0
    sub_r = 8 if sub % 8 == 0 else sub
    lane_r = 128 if lane % 128 == 0 else lane

    # Free row-major reshapes only -- no transpose, no dtype upcast in HBM.
    logits = y_pred.reshape(N, C, num_chunks, rows_pc, lane)
    labels = y_true.reshape(N, num_chunks, rows_pc, lane).astype(jnp.int32)
    # TODO(synk): stream labels as int8 (valid for C < 128) to cut label HBM
    # bytes ~4x on v5e; kept int32 here for maximum lowering robustness.

    kernel = _make_kernel(C, sub_r, lane_r, focal_approx_recip)

    out = pl.pallas_call(
        kernel,
        out_shape=jax.ShapeDtypeStruct((N, num_chunks, 4, C, 1), jnp.float32),
        grid_spec=pltpu.PrefetchScalarGridSpec(
            num_scalar_prefetch=0,
            grid=(N, num_chunks, steps),
            in_specs=[
                pl.BlockSpec((pl.Squeezed(), C, pl.Squeezed(), sub, lane),
                             lambda n, ch, t: (n, 0, ch, t, 0)),
                pl.BlockSpec((pl.Squeezed(), pl.Squeezed(), sub, lane),
                             lambda n, ch, t: (n, ch, t, 0)),
            ],
            out_specs=pl.BlockSpec(
                (pl.Squeezed(), pl.Squeezed(), 4, C, 1),
                lambda n, ch, t: (n, ch, 0, 0, 0)),
            scratch_shapes=[pltpu.VMEM((C, sub_r, lane_r), jnp.float32)
                            for _ in range(4)],
        ),
        compiler_params=pltpu.CompilerParams(
            dimension_semantics=("parallel", "parallel", "arbitrary")),
    )(logits, labels)

    # Tiny finalize in plain JAX (4 * C values per (n, chunk)).
    stats = jnp.sum(out[..., 0], axis=(0, 1))            # (4, C)
    inter, pred, true, focal_sum = stats[0], stats[1], stats[2], stats[3]

    card = pred + true
    dice_score = 2.0 * inter / jnp.maximum(card, DICE_EPS)
    present = (true > 0.0).astype(jnp.float32)
    dice_loss = jnp.mean((1.0 - dice_score) * present)    # mean over classes
    focal_loss = jnp.sum(focal_sum) / float(N * HW)       # mean/elem, sum/class
    return alpha * dice_loss + (1.0 - alpha) * focal_loss


def combo_loss_ref(y_pred, y_true, alpha=ALPHA):
    """Pure-JAX reference matching smp Dice+Focal (multiclass) defaults."""
    N, C, H, W = y_pred.shape
    x = y_pred.astype(jnp.float32)
    p = jax.nn.softmax(x, axis=1)
    oh = (y_true[:, None, :, :] == jnp.arange(C)[None, :, None, None]
          ).astype(jnp.float32)                          # (N, C, H, W)
    dims = (0, 2, 3)
    inter = jnp.sum(p * oh, axis=dims)
    card = jnp.sum(p + oh, axis=dims)
    dice_score = 2.0 * inter / jnp.maximum(card, DICE_EPS)
    present = (jnp.sum(oh, axis=dims) > 0).astype(jnp.float32)
    dice = jnp.mean((1.0 - dice_score) * present)

    logpt = jnp.maximum(x, 0.0) - x * oh + jnp.log1p(jnp.exp(-jnp.abs(x)))
    pt = jnp.exp(-logpt)
    focal_per_class = jnp.mean(((1.0 - pt) ** 2) * logpt, axis=dims)
    focal = jnp.sum(focal_per_class)
    return alpha * dice + (1.0 - alpha) * focal


if __name__ == "__main__":
    key = jax.random.PRNGKey(0)
    k1, k2 = jax.random.split(key)
    N, C, H, W = 2, 4, 16, 16
    y_pred = jax.random.normal(k1, (N, C, H, W), dtype=jnp.float32)
    y_true = jax.random.randint(k2, (N, H, W), 0, C, dtype=jnp.int32)

    ref = jax.block_until_ready(combo_loss_ref(y_pred, y_true, ALPHA))

    # Default path (approx EUP reciprocal in the focal weighting).
    loss = jax.block_until_ready(combo_loss(y_pred, y_true, ALPHA))
    assert jnp.isfinite(loss), f"non-finite loss: {loss}"
    assert jnp.allclose(loss, ref, rtol=2e-2, atol=1e-4), (loss, ref)

    # Exact-reciprocal variant must match the reference tightly.
    loss_exact = jax.block_until_ready(
        combo_loss(y_pred, y_true, ALPHA, focal_approx_recip=False))
    assert jnp.allclose(loss_exact, ref, rtol=1e-4, atol=1e-5), (loss_exact, ref)

    # bf16 logits stream straight from HBM (kernel upcasts internally);
    # compare against the reference evaluated on the same quantized logits.
    ref_bf16 = jax.block_until_ready(
        combo_loss_ref(y_pred.astype(jnp.bfloat16), y_true, ALPHA))
    loss_bf16 = jax.block_until_ready(
        combo_loss(y_pred.astype(jnp.bfloat16), y_true, ALPHA))
    assert jnp.isfinite(loss_bf16), f"non-finite bf16 loss: {loss_bf16}"
    assert jnp.allclose(loss_bf16, ref_bf16, rtol=2e-2, atol=1e-4), (loss_bf16, ref_bf16)

    print("KERNEL_OK")
</pallas_src>

<mosaic_0001>
module attributes {stable_mosaic.version = 11 : i64} {
  func.func @kernel(%arg0: i32, %arg1: i32, %arg2: i32, %arg3: memref<1x4x1x1x256xf32, #tpu.memory_space<vmem>>, %arg4: memref<1x1x1x256xi32, #tpu.memory_space<vmem>>, %arg5: memref<1x1x4x4x1xf32, #tpu.memory_space<vmem>>, %arg6: memref<4x1x128xf32, #tpu.memory_space<vmem>>, %arg7: memref<4x1x128xf32, #tpu.memory_space<vmem>>, %arg8: memref<4x1x128xf32, #tpu.memory_space<vmem>>, %arg9: memref<4x1x128xf32, #tpu.memory_space<vmem>>) attributes {dimension_semantics = [#tpu.dimension_semantics<parallel>, #tpu.dimension_semantics<parallel>, #tpu.dimension_semantics<arbitrary>], iteration_bounds = array<i64: 2, 1, 1>, scalar_prefetch = 0 : i64, scratch_operands = 4 : i64, tpu.core_type = #tpu.core_type<tc>, window_params = [{transform_indices = @transform_0, window_bounds = array<i64: 1, 4, 1, 1, 256>}, {transform_indices = @transform_1, window_bounds = array<i64: 1, 1, 1, 256>}, {transform_indices = @transform_2, window_bounds = array<i64: 1, 1, 4, 4, 1>}]} {
    %c0_i32 = arith.constant 0 : i32
    %0 = arith.cmpi eq, %arg2, %c0_i32 : i32
    %1 = arith.extui %0 : i1 to i32
    %c0_i32_0 = arith.constant 0 : i32
    %2 = arith.cmpi ne, %1, %c0_i32_0 : i32
    scf.if %2 {
      %cst_143 = arith.constant 0.000000e+00 : f32
      %291 = vector.broadcast %cst_143 : f32 to vector<4x1x128xf32>
      %c0_144 = arith.constant 0 : index
      %c0_145 = arith.constant 0 : index
      %c0_146 = arith.constant 0 : index
      %292 = vector.load %arg6[%c0_144, %c0_145, %c0_146] : memref<4x1x128xf32, #tpu.memory_space<vmem>>, vector<4x1x128xf32>
      tpu.vector_store %arg6[%c0_144, %c0_145, %c0_146], %291 {strides = array<i32>} : memref<4x1x128xf32, #tpu.memory_space<vmem>>, vector<4x1x128xf32>,
      %cst_147 = arith.constant 0.000000e+00 : f32
      %293 = vector.broadcast %cst_147 : f32 to vector<4x1x128xf32>
      %c0_148 = arith.constant 0 : index
      %c0_149 = arith.constant 0 : index
      %c0_150 = arith.constant 0 : index
      %294 = vector.load %arg7[%c0_148, %c0_149, %c0_150] : memref<4x1x128xf32, #tpu.memory_space<vmem>>, vector<4x1x128xf32>
      tpu.vector_store %arg7[%c0_148, %c0_149, %c0_150], %293 {strides = array<i32>} : memref<4x1x128xf32, #tpu.memory_space<vmem>>, vector<4x1x128xf32>,
      %cst_151 = arith.constant 0.000000e+00 : f32
      %295 = vector.broadcast %cst_151 : f32 to vector<4x1x128xf32>
      %c0_152 = arith.constant 0 : index
      %c0_153 = arith.constant 0 : index
      %c0_154 = arith.constant 0 : index
      %296 = vector.load %arg8[%c0_152, %c0_153, %c0_154] : memref<4x1x128xf32, #tpu.memory_space<vmem>>, vector<4x1x128xf32>
      tpu.vector_store %arg8[%c0_152, %c0_153, %c0_154], %295 {strides = array<i32>} : memref<4x1x128xf32, #tpu.memory_space<vmem>>, vector<4x1x128xf32>,
      %cst_155 = arith.constant 0.000000e+00 : f32
      %297 = vector.broadcast %cst_155 : f32 to vector<4x1x128xf32>
      %c0_156 = arith.constant 0 : index
      %c0_157 = arith.constant 0 : index
      %c0_158 = arith.constant 0 : index
      %298 = vector.load %arg9[%c0_156, %c0_157, %c0_158] : memref<4x1x128xf32, #tpu.memory_space<vmem>>, vector<4x1x128xf32>
      tpu.vector_store %arg9[%c0_156, %c0_157, %c0_158], %297 {strides = array<i32>} : memref<4x1x128xf32, #tpu.memory_space<vmem>>, vector<4x1x128xf32>,
    } else {
    }
    %c0 = arith.constant 0 : index
    %c0_1 = arith.constant 0 : index
    %c0_2 = arith.constant 0 : index
    %c0_3 = arith.constant 0 : index
    %3 = vector.load %arg4[%c0, %c0_1, %c0_2, %c0_3] : memref<1x1x1x256xi32, #tpu.memory_space<vmem>>, vector<1x1x1x256xi32>
    %4 = vector.shape_cast %3 : vector<1x1x1x256xi32> to vector<1x256xi32>
    %c0_4 = arith.constant 0 : index
    %c0_5 = arith.constant 0 : index
    %c0_6 = arith.constant 0 : index
    %c0_7 = arith.constant 0 : index
    %c0_8 = arith.constant 0 : index
    %5 = vector.load %arg3[%c0_4, %c0_5, %c0_6, %c0_7, %c0_8] : memref<1x4x1x1x256xf32, #tpu.memory_space<vmem>>, vector<1x1x1x1x256xf32>
    %6 = vector.shape_cast %5 : vector<1x1x1x1x256xf32> to vector<1x256xf32>
    %c0_9 = arith.constant 0 : index
    %c1 = arith.constant 1 : index
    %c0_10 = arith.constant 0 : index
    %c0_11 = arith.constant 0 : index
    %c0_12 = arith.constant 0 : index
    %7 = vector.load %arg3[%c0_9, %c1, %c0_10, %c0_11, %c0_12] : memref<1x4x1x1x256xf32, #tpu.memory_space<vmem>>, vector<1x1x1x1x256xf32>
    %8 = vector.shape_cast %7 : vector<1x1x1x1x256xf32> to vector<1x256xf32>
    %c0_13 = arith.constant 0 : index
    %c2 = arith.constant 2 : index
    %c0_14 = arith.constant 0 : index
    %c0_15 = arith.constant 0 : index
    %c0_16 = arith.constant 0 : index
    %9 = vector.load %arg3[%c0_13, %c2, %c0_14, %c0_15, %c0_16] : memref<1x4x1x1x256xf32, #tpu.memory_space<vmem>>, vector<1x1x1x1x256xf32>
    %10 = vector.shape_cast %9 : vector<1x1x1x1x256xf32> to vector<1x256xf32>
    %c0_17 = arith.constant 0 : index
    %c3 = arith.constant 3 : index
    %c0_18 = arith.constant 0 : index
    %c0_19 = arith.constant 0 : index
    %c0_20 = arith.constant 0 : index
    %11 = vector.load %arg3[%c0_17, %c3, %c0_18, %c0_19, %c0_20] : memref<1x4x1x1x256xf32, #tpu.memory_space<vmem>>, vector<1x1x1x1x256xf32>
    %12 = vector.shape_cast %11 : vector<1x1x1x1x256xf32> to vector<1x256xf32>
    %13 = arith.maximumf %6, %8 : vector<1x256xf32>
    %14 = arith.maximumf %13, %10 : vector<1x256xf32>
    %15 = arith.maximumf %14, %12 : vector<1x256xf32>
    %16 = arith.subf %6, %15 : vector<1x256xf32>
    %17 = math.exp %16 : vector<1x256xf32>
    %18 = arith.subf %8, %15 : vector<1x256xf32>
    %19 = math.exp %18 : vector<1x256xf32>
    %20 = arith.subf %10, %15 : vector<1x256xf32>
    %21 = math.exp %20 : vector<1x256xf32>
    %22 = arith.subf %12, %15 : vector<1x256xf32>
    %23 = math.exp %22 : vector<1x256xf32>
    %24 = arith.addf %17, %19 : vector<1x256xf32>
    %25 = arith.addf %24, %21 : vector<1x256xf32>
    %26 = arith.addf %25, %23 : vector<1x256xf32>
    %27 = tpu.reciprocal %26 : vector<1x256xf32> -> vector<1x256xf32>
    %28 = arith.mulf %17, %27 : vector<1x256xf32>
    %c0_i32_21 = arith.constant 0 : i32
    %29 = vector.broadcast %c0_i32_21 : i32 to vector<1x256xi32>
    %30 = arith.cmpi eq, %4, %29 : vector<1x256xi32>
    %31 = arith.extui %30 : vector<1x256xi1> to vector<1x256xi32>
    %32 = arith.sitofp %31 : vector<1x256xi32> to vector<1x256xf32>
    %33 = math.absf %6 : vector<1x256xf32>
    %cst = arith.constant 0.000000e+00 : f32
    %34 = vector.broadcast %cst : f32 to vector<1x256xf32>
    %35 = arith.subf %34, %33 : vector<1x256xf32>
    %36 = math.exp %35 : vector<1x256xf32>
    %cst_22 = arith.constant 0.000000e+00 : f32
    %37 = vector.broadcast %cst_22 : f32 to vector<1x256xf32>
    %38 = arith.maximumf %6, %37 : vector<1x256xf32>
    %39 = arith.mulf %6, %32 : vector<1x256xf32>
    %40 = arith.subf %38, %39 : vector<1x256xf32>
    %41 = math.log1p %36 : vector<1x256xf32>
    %42 = arith.addf %40, %41 : vector<1x256xf32>
    %cst_23 = arith.constant 0.000000e+00 : f32
    %43 = vector.broadcast %cst_23 : f32 to vector<1x256xf32>
    %44 = arith.cmpf oge, %6, %43 : vector<1x256xf32>
    %cst_24 = arith.constant 1.000000e+00 : f32
    %45 = vector.broadcast %cst_24 : f32 to vector<1x256xf32>
    %46 = arith.select %44, %36, %45 : vector<1x256xi1>, vector<1x256xf32>
    %cst_25 = arith.constant 1.000000e+00 : f32
    %47 = vector.broadcast %cst_25 : f32 to vector<1x256xf32>
    %48 = arith.select %44, %47, %36 : vector<1x256xi1>, vector<1x256xf32>
    %49 = arith.select %30, %46, %48 : vector<1x256xi1>, vector<1x256xf32>
    %cst_26 = arith.constant 1.000000e+00 : f32
    %50 = vector.broadcast %cst_26 : f32 to vector<1x256xf32>
    %51 = arith.addf %50, %36 : vector<1x256xf32>
    %52 = tpu.reciprocal %51 {approx = true} : vector<1x256xf32> -> vector<1x256xf32>
    %53 = arith.mulf %49, %52 : vector<1x256xf32>
    %54 = arith.mulf %53, %53 : vector<1x256xf32>
    %55 = arith.mulf %54, %42 : vector<1x256xf32>
    %c0_27 = arith.constant 0 : index
    %c0_28 = arith.constant 0 : index
    %c0_29 = arith.constant 0 : index
    %56 = vector.load %arg6[%c0_27, %c0_28, %c0_29] : memref<4x1x128xf32, #tpu.memory_space<vmem>>, vector<1x1x128xf32>
    %57 = vector.shape_cast %56 : vector<1x1x128xf32> to vector<1x128xf32>
    %58 = arith.mulf %28, %32 : vector<1x256xf32>
    %59 = vector.extract_strided_slice %58 {offsets = [0, 0], sizes = [1, 128], strides = [1, 1]} : vector<1x256xf32> to vector<1x128xf32>
    %60 = vector.extract_strided_slice %58 {offsets = [0, 128], sizes = [1, 128], strides = [1, 1]} : vector<1x256xf32> to vector<1x128xf32>
    %61 = arith.addf %59, %60 : vector<1x128xf32>
    %62 = arith.addf %57, %61 : vector<1x128xf32>
    %c0_30 = arith.constant 0 : index
    %c0_31 = arith.constant 0 : index
    %c0_32 = arith.constant 0 : index
    %63 = vector.load %arg6[%c0_30, %c0_31, %c0_32] : memref<4x1x128xf32, #tpu.memory_space<vmem>>, vector<1x1x128xf32>
    %64 = vector.shape_cast %63 : vector<1x1x128xf32> to vector<1x128xf32>
    %65 = vector.shape_cast %62 : vector<1x128xf32> to vector<1x1x128xf32>
    tpu.vector_store %arg6[%c0_30, %c0_31, %c0_32], %65 {strides = array<i32>} : memref<4x1x128xf32, #tpu.memory_space<vmem>>, vector<1x1x128xf32>,
    %c0_33 = arith.constant 0 : index
    %c0_34 = arith.constant 0 : index
    %c0_35 = arith.constant 0 : index
    %66 = vector.load %arg7[%c0_33, %c0_34, %c0_35] : memref<4x1x128xf32, #tpu.memory_space<vmem>>, vector<1x1x128xf32>
    %67 = vector.shape_cast %66 : vector<1x1x128xf32> to vector<1x128xf32>
    %68 = vector.extract_strided_slice %28 {offsets = [0, 0], sizes = [1, 128], strides = [1, 1]} : vector<1x256xf32> to vector<1x128xf32>
    %69 = vector.extract_strided_slice %28 {offsets = [0, 128], sizes = [1, 128], strides = [1, 1]} : vector<1x256xf32> to vector<1x128xf32>
    %70 = arith.addf %68, %69 : vector<1x128xf32>
    %71 = arith.addf %67, %70 : vector<1x128xf32>
    %c0_36 = arith.constant 0 : index
    %c0_37 = arith.constant 0 : index
    %c0_38 = arith.constant 0 : index
    %72 = vector.load %arg7[%c0_36, %c0_37, %c0_38] : memref<4x1x128xf32, #tpu.memory_space<vmem>>, vector<1x1x128xf32>
    %73 = vector.shape_cast %72 : vector<1x1x128xf32> to vector<1x128xf32>
    %74 = vector.shape_cast %71 : vector<1x128xf32> to vector<1x1x128xf32>
    tpu.vector_store %arg7[%c0_36, %c0_37, %c0_38], %74 {strides = array<i32>} : memref<4x1x128xf32, #tpu.memory_space<vmem>>, vector<1x1x128xf32>,
    %c0_39 = arith.constant 0 : index
    %c0_40 = arith.constant 0 : index
    %c0_41 = arith.constant 0 : index
    %75 = vector.load %arg8[%c0_39, %c0_40, %c0_41] : memref<4x1x128xf32, #tpu.memory_space<vmem>>, vector<1x1x128xf32>
    %76 = vector.shape_cast %75 : vector<1x1x128xf32> to vector<1x128xf32>
    %77 = vector.extract_strided_slice %32 {offsets = [0, 0], sizes = [1, 128], strides = [1, 1]} : vector<1x256xf32> to vector<1x128xf32>
    %78 = vector.extract_strided_slice %32 {offsets = [0, 128], sizes = [1, 128], strides = [1, 1]} : vector<1x256xf32> to vector<1x128xf32>
    %79 = arith.addf %77, %78 : vector<1x128xf32>
    %80 = arith.addf %76, %79 : vector<1x128xf32>
    %c0_42 = arith.constant 0 : index
    %c0_43 = arith.constant 0 : index
    %c0_44 = arith.constant 0 : index
    %81 = vector.load %arg8[%c0_42, %c0_43, %c0_44] : memref<4x1x128xf32, #tpu.memory_space<vmem>>, vector<1x1x128xf32>
    %82 = vector.shape_cast %81 : vector<1x1x128xf32> to vector<1x128xf32>
    %83 = vector.shape_cast %80 : vector<1x128xf32> to vector<1x1x128xf32>
    tpu.vector_store %arg8[%c0_42, %c0_43, %c0_44], %83 {strides = array<i32>} : memref<4x1x128xf32, #tpu.memory_space<vmem>>, vector<1x1x128xf32>,
    %c0_45 = arith.constant 0 : index
    %c0_46 = arith.constant 0 : index
    %c0_47 = arith.constant 0 : index
    %84 = vector.load %arg9[%c0_45, %c0_46, %c0_47] : memref<4x1x128xf32, #tpu.memory_space<vmem>>, vector<1x1x128xf32>
    %85 = vector.shape_cast %84 : vector<1x1x128xf32> to vector<1x128xf32>
    %86 = vector.extract_strided_slice %55 {offsets = [0, 0], sizes = [1, 128], strides = [1, 1]} : vector<1x256xf32> to vector<1x128xf32>
    %87 = vector.extract_strided_slice %55 {offsets = [0, 128], sizes = [1, 128], strides = [1, 1]} : vector<1x256xf32> to vector<1x128xf32>
    %88 = arith.addf %86, %87 : vector<1x128xf32>
    %89 = arith.addf %85, %88 : vector<1x128xf32>
    %c0_48 = arith.constant 0 : index
    %c0_49 = arith.constant 0 : index
    %c0_50 = arith.constant 0 : index
    %90 = vector.load %arg9[%c0_48, %c0_49, %c0_50] : memref<4x1x128xf32, #tpu.memory_space<vmem>>, vector<1x1x128xf32>
    %91 = vector.shape_cast %90 : vector<1x1x128xf32> to vector<1x128xf32>
    %92 = vector.shape_cast %89 : vector<1x128xf32> to vector<1x1x128xf32>
    tpu.vector_store %arg9[%c0_48, %c0_49, %c0_50], %92 {strides = array<i32>} : memref<4x1x128xf32, #tpu.memory_space<vmem>>, vector<1x1x128xf32>,
    %93 = arith.mulf %19, %27 : vector<1x256xf32>
    %c1_i32 = arith.constant 1 : i32
    %94 = vector.broadcast %c1_i32 : i32 to vector<1x256xi32>
    %95 = arith.cmpi eq, %4, %94 : vector<1x256xi32>
    %96 = arith.extui %95 : vector<1x256xi1> to vector<1x256xi32>
    %97 = arith.sitofp %96 : vector<1x256xi32> to vector<1x256xf32>
    %98 = math.absf %8 : vector<1x256xf32>
    %cst_51 = arith.constant 0.000000e+00 : f32
    %99 = vector.broadcast %cst_51 : f32 to vector<1x256xf32>
    %100 = arith.subf %99, %98 : vector<1x256xf32>
    %101 = math.exp %100 : vector<1x256xf32>
    %cst_52 = arith.constant 0.000000e+00 : f32
    %102 = vector.broadcast %cst_52 : f32 to vector<1x256xf32>
    %103 = arith.maximumf %8, %102 : vector<1x256xf32>
    %104 = arith.mulf %8, %97 : vector<1x256xf32>
    %105 = arith.subf %103, %104 : vector<1x256xf32>
    %106 = math.log1p %101 : vector<1x256xf32>
    %107 = arith.addf %105, %106 : vector<1x256xf32>
    %cst_53 = arith.constant 0.000000e+00 : f32
    %108 = vector.broadcast %cst_53 : f32 to vector<1x256xf32>
    %109 = arith.cmpf oge, %8, %108 : vector<1x256xf32>
    %cst_54 = arith.constant 1.000000e+00 : f32
    %110 = vector.broadcast %cst_54 : f32 to vector<1x256xf32>
    %111 = arith.select %109, %101, %110 : vector<1x256xi1>, vector<1x256xf32>
    %cst_55 = arith.constant 1.000000e+00 : f32
    %112 = vector.broadcast %cst_55 : f32 to vector<1x256xf32>
    %113 = arith.select %109, %112, %101 : vector<1x256xi1>, vector<1x256xf32>
    %114 = arith.select %95, %111, %113 : vector<1x256xi1>, vector<1x256xf32>
    %cst_56 = arith.constant 1.000000e+00 : f32
    %115 = vector.broadcast %cst_56 : f32 to vector<1x256xf32>
    %116 = arith.addf %115, %101 : vector<1x256xf32>
    %117 = tpu.reciprocal %116 {approx = true} : vector<1x256xf32> -> vector<1x256xf32>
    %118 = arith.mulf %114, %117 : vector<1x256xf32>
    %119 = arith.mulf %118, %118 : vector<1x256xf32>
    %120 = arith.mulf %119, %107 : vector<1x256xf32>
    %c1_57 = arith.constant 1 : index
    %c0_58 = arith.constant 0 : index
    %c0_59 = arith.constant 0 : index
    %121 = vector.load %arg6[%c1_57, %c0_58, %c0_59] : memref<4x1x128xf32, #tpu.memory_space<vmem>>, vector<1x1x128xf32>
    %122 = vector.shape_cast %121 : vector<1x1x128xf32> to vector<1x128xf32>
    %123 = arith.mulf %93, %97 : vector<1x256xf32>
    %124 = vector.extract_strided_slice %123 {offsets = [0, 0], sizes = [1, 128], strides = [1, 1]} : vector<1x256xf32> to vector<1x128xf32>
    %125 = vector.extract_strided_slice %123 {offsets = [0, 128], sizes = [1, 128], strides = [1, 1]} : vector<1x256xf32> to vector<1x128xf32>
    %126 = arith.addf %124, %125 : vector<1x128xf32>
    %127 = arith.addf %122, %126 : vector<1x128xf32>
    %c1_60 = arith.constant 1 : index
    %c0_61 = arith.constant 0 : index
    %c0_62 = arith.constant 0 : index
    %128 = vector.load %arg6[%c1_60, %c0_61, %c0_62] : memref<4x1x128xf32, #tpu.memory_space<vmem>>, vector<1x1x128xf32>
    %129 = vector.shape_cast %128 : vector<1x1x128xf32> to vector<1x128xf32>
    %130 = vector.shape_cast %127 : vector<1x128xf32> to vector<1x1x128xf32>
    tpu.vector_store %arg6[%c1_60, %c0_61, %c0_62], %130 {strides = array<i32>} : memref<4x1x128xf32, #tpu.memory_space<vmem>>, vector<1x1x128xf32>,
    %c1_63 = arith.constant 1 : index
    %c0_64 = arith.constant 0 : index
    %c0_65 = arith.constant 0 : index
    %131 = vector.load %arg7[%c1_63, %c0_64, %c0_65] : memref<4x1x128xf32, #tpu.memory_space<vmem>>, vector<1x1x128xf32>
    %132 = vector.shape_cast %131 : vector<1x1x128xf32> to vector<1x128xf32>
    %133 = vector.extract_strided_slice %93 {offsets = [0, 0], sizes = [1, 128], strides = [1, 1]} : vector<1x256xf32> to vector<1x128xf32>
    %134 = vector.extract_strided_slice %93 {offsets = [0, 128], sizes = [1, 128], strides = [1, 1]} : vector<1x256xf32> to vector<1x128xf32>
    %135 = arith.addf %133, %134 : vector<1x128xf32>
    %136 = arith.addf %132, %135 : vector<1x128xf32>
    %c1_66 = arith.constant 1 : index
    %c0_67 = arith.constant 0 : index
    %c0_68 = arith.constant 0 : index
    %137 = vector.load %arg7[%c1_66, %c0_67, %c0_68] : memref<4x1x128xf32, #tpu.memory_space<vmem>>, vector<1x1x128xf32>
    %138 = vector.shape_cast %137 : vector<1x1x128xf32> to vector<1x128xf32>
    %139 = vector.shape_cast %136 : vector<1x128xf32> to vector<1x1x128xf32>
    tpu.vector_store %arg7[%c1_66, %c0_67, %c0_68], %139 {strides = array<i32>} : memref<4x1x128xf32, #tpu.memory_space<vmem>>, vector<1x1x128xf32>,
    %c1_69 = arith.constant 1 : index
    %c0_70 = arith.constant 0 : index
    %c0_71 = arith.constant 0 : index
    %140 = vector.load %arg8[%c1_69, %c0_70, %c0_71] : memref<4x1x128xf32, #tpu.memory_space<vmem>>, vector<1x1x128xf32>
    %141 = vector.shape_cast %140 : vector<1x1x128xf32> to vector<1x128xf32>
    %142 = vector.extract_strided_slice %97 {offsets = [0, 0], sizes = [1, 128], strides = [1, 1]} : vector<1x256xf32> to vector<1x128xf32>
    %143 = vector.extract_strided_slice %97 {offsets = [0, 128], sizes = [1, 128], strides = [1, 1]} : vector<1x256xf32> to vector<1x128xf32>
    %144 = arith.addf %142, %143 : vector<1x128xf32>
    %145 = arith.addf %141, %144 : vector<1x128xf32>
    %c1_72 = arith.constant 1 : index
    %c0_73 = arith.constant 0 : index
    %c0_74 = arith.constant 0 : index
    %146 = vector.load %arg8[%c1_72, %c0_73, %c0_74] : memref<4x1x128xf32, #tpu.memory_space<vmem>>, vector<1x1x128xf32>
    %147 = vector.shape_cast %146 : vector<1x1x128xf32> to vector<1x128xf32>
    %148 = vector.shape_cast %145 : vector<1x128xf32> to vector<1x1x128xf32>
    tpu.vector_store %arg8[%c1_72, %c0_73, %c0_74], %148 {strides = array<i32>} : memref<4x1x128xf32, #tpu.memory_space<vmem>>, vector<1x1x128xf32>,
    %c1_75 = arith.constant 1 : index
    %c0_76 = arith.constant 0 : index
    %c0_77 = arith.constant 0 : index
    %149 = vector.load %arg9[%c1_75, %c0_76, %c0_77] : memref<4x1x128xf32, #tpu.memory_space<vmem>>, vector<1x1x128xf32>
    %150 = vector.shape_cast %149 : vector<1x1x128xf32> to vector<1x128xf32>
    %151 = vector.extract_strided_slice %120 {offsets = [0, 0], sizes = [1, 128], strides = [1, 1]} : vector<1x256xf32> to vector<1x128xf32>
    %152 = vector.extract_strided_slice %120 {offsets = [0, 128], sizes = [1, 128], strides = [1, 1]} : vector<1x256xf32> to vector<1x128xf32>
    %153 = arith.addf %151, %152 : vector<1x128xf32>
    %154 = arith.addf %150, %153 : vector<1x128xf32>
    %c1_78 = arith.constant 1 : index
    %c0_79 = arith.constant 0 : index
    %c0_80 = arith.constant 0 : index
    %155 = vector.load %arg9[%c1_78, %c0_79, %c0_80] : memref<4x1x128xf32, #tpu.memory_space<vmem>>, vector<1x1x128xf32>
    %156 = vector.shape_cast %155 : vector<1x1x128xf32> to vector<1x128xf32>
    %157 = vector.shape_cast %154 : vector<1x128xf32> to vector<1x1x128xf32>
    tpu.vector_store %arg9[%c1_78, %c0_79, %c0_80], %157 {strides = array<i32>} : memref<4x1x128xf32, #tpu.memory_space<vmem>>, vector<1x1x128xf32>,
    %158 = arith.mulf %21, %27 : vector<1x256xf32>
    %c2_i32 = arith.constant 2 : i32
    %159 = vector.broadcast %c2_i32 : i32 to vector<1x256xi32>
    %160 = arith.cmpi eq, %4, %159 : vector<1x256xi32>
    %161 = arith.extui %160 : vector<1x256xi1> to vector<1x256xi32>
    %162 = arith.sitofp %161 : vector<1x256xi32> to vector<1x256xf32>
    %163 = math.absf %10 : vector<1x256xf32>
    %cst_81 = arith.constant 0.000000e+00 : f32
    %164 = vector.broadcast %cst_81 : f32 to vector<1x256xf32>
    %165 = arith.subf %164, %163 : vector<1x256xf32>
    %166 = math.exp %165 : vector<1x256xf32>
    %cst_82 = arith.constant 0.000000e+00 : f32
    %167 = vector.broadcast %cst_82 : f32 to vector<1x256xf32>
    %168 = arith.maximumf %10, %167 : vector<1x256xf32>
    %169 = arith.mulf %10, %162 : vector<1x256xf32>
    %170 = arith.subf %168, %169 : vector<1x256xf32>
    %171 = math.log1p %166 : vector<1x256xf32>
    %172 = arith.addf %170, %171 : vector<1x256xf32>
    %cst_83 = arith.constant 0.000000e+00 : f32
    %173 = vector.broadcast %cst_83 : f32 to vector<1x256xf32>
    %174 = arith.cmpf oge, %10, %173 : vector<1x256xf32>
    %cst_84 = arith.constant 1.000000e+00 : f32
    %175 = vector.broadcast %cst_84 : f32 to vector<1x256xf32>
    %176 = arith.select %174, %166, %175 : vector<1x256xi1>, vector<1x256xf32>
    %cst_85 = arith.constant 1.000000e+00 : f32
    %177 = vector.broadcast %cst_85 : f32 to vector<1x256xf32>
    %178 = arith.select %174, %177, %166 : vector<1x256xi1>, vector<1x256xf32>
    %179 = arith.select %160, %176, %178 : vector<1x256xi1>, vector<1x256xf32>
    %cst_86 = arith.constant 1.000000e+00 : f32
    %180 = vector.broadcast %cst_86 : f32 to vector<1x256xf32>
    %181 = arith.addf %180, %166 : vector<1x256xf32>
    %182 = tpu.reciprocal %181 {approx = true} : vector<1x256xf32> -> vector<1x256xf32>
    %183 = arith.mulf %179, %182 : vector<1x256xf32>
    %184 = arith.mulf %183, %183 : vector<1x256xf32>
    %185 = arith.mulf %184, %172 : vector<1x256xf32>
    %c2_87 = arith.constant 2 : index
    %c0_88 = arith.constant 0 : index
    %c0_89 = arith.constant 0 : index
    %186 = vector.load %arg6[%c2_87, %c0_88, %c0_89] : memref<4x1x128xf32, #tpu.memory_space<vmem>>, vector<1x1x128xf32>
    %187 = vector.shape_cast %186 : vector<1x1x128xf32> to vector<1x128xf32>
    %188 = arith.mulf %158, %162 : vector<1x256xf32>
    %189 = vector.extract_strided_slice %188 {offsets = [0, 0], sizes = [1, 128], strides = [1, 1]} : vector<1x256xf32> to vector<1x128xf32>
    %190 = vector.extract_strided_slice %188 {offsets = [0, 128], sizes = [1, 128], strides = [1, 1]} : vector<1x256xf32> to vector<1x128xf32>
    %191 = arith.addf %189, %190 : vector<1x128xf32>
    %192 = arith.addf %187, %191 : vector<1x128xf32>
    %c2_90 = arith.constant 2 : index
    %c0_91 = arith.constant 0 : index
    %c0_92 = arith.constant 0 : index
    %193 = vector.load %arg6[%c2_90, %c0_91, %c0_92] : memref<4x1x128xf32, #tpu.memory_space<vmem>>, vector<1x1x128xf32>
    %194 = vector.shape_cast %193 : vector<1x1x128xf32> to vector<1x128xf32>
    %195 = vector.shape_cast %192 : vector<1x128xf32> to vector<1x1x128xf32>
    tpu.vector_store %arg6[%c2_90, %c0_91, %c0_92], %195 {strides = array<i32>} : memref<4x1x128xf32, #tpu.memory_space<vmem>>, vector<1x1x128xf32>,
    %c2_93 = arith.constant 2 : index
    %c0_94 = arith.constant 0 : index
    %c0_95 = arith.constant 0 : index
    %196 = vector.load %arg7[%c2_93, %c0_94, %c0_95] : memref<4x1x128xf32, #tpu.memory_space<vmem>>, vector<1x1x128xf32>
    %197 = vector.shape_cast %196 : vector<1x1x128xf32> to vector<1x128xf32>
    %198 = vector.extract_strided_slice %158 {offsets = [0, 0], sizes = [1, 128], strides = [1, 1]} : vector<1x256xf32> to vector<1x128xf32>
    %199 = vector.extract_strided_slice %158 {offsets = [0, 128], sizes = [1, 128], strides = [1, 1]} : vector<1x256xf32> to vector<1x128xf32>
    %200 = arith.addf %198, %199 : vector<1x128xf32>
    %201 = arith.addf %197, %200 : vector<1x128xf32>
    %c2_96 = arith.constant 2 : index
    %c0_97 = arith.constant 0 : index
    %c0_98 = arith.constant 0 : index
    %202 = vector.load %arg7[%c2_96, %c0_97, %c0_98] : memref<4x1x128xf32, #tpu.memory_space<vmem>>, vector<1x1x128xf32>
    %203 = vector.shape_cast %202 : vector<1x1x128xf32> to vector<1x128xf32>
    %204 = vector.shape_cast %201 : vector<1x128xf32> to vector<1x1x128xf32>
    tpu.vector_store %arg7[%c2_96, %c0_97, %c0_98], %204 {strides = array<i32>} : memref<4x1x128xf32, #tpu.memory_space<vmem>>, vector<1x1x128xf32>,
    %c2_99 = arith.constant 2 : index
    %c0_100 = arith.constant 0 : index
    %c0_101 = arith.constant 0 : index
    %205 = vector.load %arg8[%c2_99, %c0_100, %c0_101] : memref<4x1x128xf32, #tpu.memory_space<vmem>>, vector<1x1x128xf32>
    %206 = vector.shape_cast %205 : vector<1x1x128xf32> to vector<1x128xf32>
    %207 = vector.extract_strided_slice %162 {offsets = [0, 0], sizes = [1, 128], strides = [1, 1]} : vector<1x256xf32> to vector<1x128xf32>
    %208 = vector.extract_strided_slice %162 {offsets = [0, 128], sizes = [1, 128], strides = [1, 1]} : vector<1x256xf32> to vector<1x128xf32>
    %209 = arith.addf %207, %208 : vector<1x128xf32>
    %210 = arith.addf %206, %209 : vector<1x128xf32>
    %c2_102 = arith.constant 2 : index
    %c0_103 = arith.constant 0 : index
    %c0_104 = arith.constant 0 : index
    %211 = vector.load %arg8[%c2_102, %c0_103, %c0_104] : memref<4x1x128xf32, #tpu.memory_space<vmem>>, vector<1x1x128xf32>
    %212 = vector.shape_cast %211 : vector<1x1x128xf32> to vector<1x128xf32>
    %213 = vector.shape_cast %210 : vector<1x128xf32> to vector<1x1x128xf32>
    tpu.vector_store %arg8[%c2_102, %c0_103, %c0_104], %213 {strides = array<i32>} : memref<4x1x128xf32, #tpu.memory_space<vmem>>, vector<1x1x128xf32>,
    %c2_105 = arith.constant 2 : index
    %c0_106 = arith.constant 0 : index
    %c0_107 = arith.constant 0 : index
    %214 = vector.load %arg9[%c2_105, %c0_106, %c0_107] : memref<4x1x128xf32, #tpu.memory_space<vmem>>, vector<1x1x128xf32>
    %215 = vector.shape_cast %214 : vector<1x1x128xf32> to vector<1x128xf32>
    %216 = vector.extract_strided_slice %185 {offsets = [0, 0], sizes = [1, 128], strides = [1, 1]} : vector<1x256xf32> to vector<1x128xf32>
    %217 = vector.extract_strided_slice %185 {offsets = [0, 128], sizes = [1, 128], strides = [1, 1]} : vector<1x256xf32> to vector<1x128xf32>
    %218 = arith.addf %216, %217 : vector<1x128xf32>
    %219 = arith.addf %215, %218 : vector<1x128xf32>
    %c2_108 = arith.constant 2 : index
    %c0_109 = arith.constant 0 : index
    %c0_110 = arith.constant 0 : index
    %220 = vector.load %arg9[%c2_108, %c0_109, %c0_110] : memref<4x1x128xf32, #tpu.memory_space<vmem>>, vector<1x1x128xf32>
    %221 = vector.shape_cast %220 : vector<1x1x128xf32> to vector<1x128xf32>
    %222 = vector.shape_cast %219 : vector<1x128xf32> to vector<1x1x128xf32>
    tpu.vector_store %arg9[%c2_108, %c0_109, %c0_110], %222 {strides = array<i32>} : memref<4x1x128xf32, #tpu.memory_space<vmem>>, vector<1x1x128xf32>,
    %223 = arith.mulf %23, %27 : vector<1x256xf32>
    %c3_i32 = arith.constant 3 : i32
    %224 = vector.broadcast %c3_i32 : i32 to vector<1x256xi32>
    %225 = arith.cmpi eq, %4, %224 : vector<1x256xi32>
    %226 = arith.extui %225 : vector<1x256xi1> to vector<1x256xi32>
    %227 = arith.sitofp %226 : vector<1x256xi32> to vector<1x256xf32>
    %228 = math.absf %12 : vector<1x256xf32>
    %cst_111 = arith.constant 0.000000e+00 : f32
    %229 = vector.broadcast %cst_111 : f32 to vector<1x256xf32>
    %230 = arith.subf %229, %228 : vector<1x256xf32>
    %231 = math.exp %230 : vector<1x256xf32>
    %cst_112 = arith.constant 0.000000e+00 : f32
    %232 = vector.broadcast %cst_112 : f32 to vector<1x256xf32>
    %233 = arith.maximumf %12, %232 : vector<1x256xf32>
    %234 = arith.mulf %12, %227 : vector<1x256xf32>
    %235 = arith.subf %233, %234 : vector<1x256xf32>
    %236 = math.log1p %231 : vector<1x256xf32>
    %237 = arith.addf %235, %236 : vector<1x256xf32>
    %cst_113 = arith.constant 0.000000e+00 : f32
    %238 = vector.broadcast %cst_113 : f32 to vector<1x256xf32>
    %239 = arith.cmpf oge, %12, %238 : vector<1x256xf32>
    %cst_114 = arith.constant 1.000000e+00 : f32
    %240 = vector.broadcast %cst_114 : f32 to vector<1x256xf32>
    %241 = arith.select %239, %231, %240 : vector<1x256xi1>, vector<1x256xf32>
    %cst_115 = arith.constant 1.000000e+00 : f32
    %242 = vector.broadcast %cst_115 : f32 to vector<1x256xf32>
    %243 = arith.select %239, %242, %231 : vector<1x256xi1>, vector<1x256xf32>
    %244 = arith.select %225, %241, %243 : vector<1x256xi1>, vector<1x256xf32>
    %cst_116 = arith.constant 1.000000e+00 : f32
    %245 = vector.broadcast %cst_116 : f32 to vector<1x256xf32>
    %246 = arith.addf %245, %231 : vector<1x256xf32>
    %247 = tpu.reciprocal %246 {approx = true} : vector<1x256xf32> -> vector<1x256xf32>
    %248 = arith.mulf %244, %247 : vector<1x256xf32>
    %249 = arith.mulf %248, %248 : vector<1x256xf32>
    %250 = arith.mulf %249, %237 : vector<1x256xf32>
    %c3_117 = arith.constant 3 : index
    %c0_118 = arith.constant 0 : index
    %c0_119 = arith.constant 0 : index
    %251 = vector.load %arg6[%c3_117, %c0_118, %c0_119] : memref<4x1x128xf32, #tpu.memory_space<vmem>>, vector<1x1x128xf32>
    %252 = vector.shape_cast %251 : vector<1x1x128xf32> to vector<1x128xf32>
    %253 = arith.mulf %223, %227 : vector<1x256xf32>
    %254 = vector.extract_strided_slice %253 {offsets = [0, 0], sizes = [1, 128], strides = [1, 1]} : vector<1x256xf32> to vector<1x128xf32>
    %255 = vector.extract_strided_slice %253 {offsets = [0, 128], sizes = [1, 128], strides = [1, 1]} : vector<1x256xf32> to vector<1x128xf32>
    %256 = arith.addf %254, %255 : vector<1x128xf32>
    %257 = arith.addf %252, %256 : vector<1x128xf32>
    %c3_120 = arith.constant 3 : index
    %c0_121 = arith.constant 0 : index
    %c0_122 = arith.constant 0 : index
    %258 = vector.load %arg6[%c3_120, %c0_121, %c0_122] : memref<4x1x128xf32, #tpu.memory_space<vmem>>, vector<1x1x128xf32>
    %259 = vector.shape_cast %258 : vector<1x1x128xf32> to vector<1x128xf32>
    %260 = vector.shape_cast %257 : vector<1x128xf32> to vector<1x1x128xf32>
    tpu.vector_store %arg6[%c3_120, %c0_121, %c0_122], %260 {strides = array<i32>} : memref<4x1x128xf32, #tpu.memory_space<vmem>>, vector<1x1x128xf32>,
    %c3_123 = arith.constant 3 : index
    %c0_124 = arith.constant 0 : index
    %c0_125 = arith.constant 0 : index
    %261 = vector.load %arg7[%c3_123, %c0_124, %c0_125] : memref<4x1x128xf32, #tpu.memory_space<vmem>>, vector<1x1x128xf32>
    %262 = vector.shape_cast %261 : vector<1x1x128xf32> to vector<1x128xf32>
    %263 = vector.extract_strided_slice %223 {offsets = [0, 0], sizes = [1, 128], strides = [1, 1]} : vector<1x256xf32> to vector<1x128xf32>
    %264 = vector.extract_strided_slice %223 {offsets = [0, 128], sizes = [1, 128], strides = [1, 1]} : vector<1x256xf32> to vector<1x128xf32>
    %265 = arith.addf %263, %264 : vector<1x128xf32>
    %266 = arith.addf %262, %265 : vector<1x128xf32>
    %c3_126 = arith.constant 3 : index
    %c0_127 = arith.constant 0 : index
    %c0_128 = arith.constant 0 : index
    %267 = vector.load %arg7[%c3_126, %c0_127, %c0_128] : memref<4x1x128xf32, #tpu.memory_space<vmem>>, vector<1x1x128xf32>
    %268 = vector.shape_cast %267 : vector<1x1x128xf32> to vector<1x128xf32>
    %269 = vector.shape_cast %266 : vector<1x128xf32> to vector<1x1x128xf32>
    tpu.vector_store %arg7[%c3_126, %c0_127, %c0_128], %269 {strides = array<i32>} : memref<4x1x128xf32, #tpu.memory_space<vmem>>, vector<1x1x128xf32>,
    %c3_129 = arith.constant 3 : index
    %c0_130 = arith.constant 0 : index
    %c0_131 = arith.constant 0 : index
    %270 = vector.load %arg8[%c3_129, %c0_130, %c0_131] : memref<4x1x128xf32, #tpu.memory_space<vmem>>, vector<1x1x128xf32>
    %271 = vector.shape_cast %270 : vector<1x1x128xf32> to vector<1x128xf32>
    %272 = vector.extract_strided_slice %227 {offsets = [0, 0], sizes = [1, 128], strides = [1, 1]} : vector<1x256xf32> to vector<1x128xf32>
    %273 = vector.extract_strided_slice %227 {offsets = [0, 128], sizes = [1, 128], strides = [1, 1]} : vector<1x256xf32> to vector<1x128xf32>
    %274 = arith.addf %272, %273 : vector<1x128xf32>
    %275 = arith.addf %271, %274 : vector<1x128xf32>
    %c3_132 = arith.constant 3 : index
    %c0_133 = arith.constant 0 : index
    %c0_134 = arith.constant 0 : index
    %276 = vector.load %arg8[%c3_132, %c0_133, %c0_134] : memref<4x1x128xf32, #tpu.memory_space<vmem>>, vector<1x1x128xf32>
    %277 = vector.shape_cast %276 : vector<1x1x128xf32> to vector<1x128xf32>
    %278 = vector.shape_cast %275 : vector<1x128xf32> to vector<1x1x128xf32>
    tpu.vector_store %arg8[%c3_132, %c0_133, %c0_134], %278 {strides = array<i32>} : memref<4x1x128xf32, #tpu.memory_space<vmem>>, vector<1x1x128xf32>,
    %c3_135 = arith.constant 3 : index
    %c0_136 = arith.constant 0 : index
    %c0_137 = arith.constant 0 : index
    %279 = vector.load %arg9[%c3_135, %c0_136, %c0_137] : memref<4x1x128xf32, #tpu.memory_space<vmem>>, vector<1x1x128xf32>
    %280 = vector.shape_cast %279 : vector<1x1x128xf32> to vector<1x128xf32>
    %281 = vector.extract_strided_slice %250 {offsets = [0, 0], sizes = [1, 128], strides = [1, 1]} : vector<1x256xf32> to vector<1x128xf32>
    %282 = vector.extract_strided_slice %250 {offsets = [0, 128], sizes = [1, 128], strides = [1, 1]} : vector<1x256xf32> to vector<1x128xf32>
    %283 = arith.addf %281, %282 : vector<1x128xf32>
    %284 = arith.addf %280, %283 : vector<1x128xf32>
    %c3_138 = arith.constant 3 : index
    %c0_139 = arith.constant 0 : index
    %c0_140 = arith.constant 0 : index
    %285 = vector.load %arg9[%c3_138, %c0_139, %c0_140] : memref<4x1x128xf32, #tpu.memory_space<vmem>>, vector<1x1x128xf32>
    %286 = vector.shape_cast %285 : vector<1x1x128xf32> to vector<1x128xf32>
    %287 = vector.shape_cast %284 : vector<1x128xf32> to vector<1x1x128xf32>
    tpu.vector_store %arg9[%c3_138, %c0_139, %c0_140], %287 {strides = array<i32>} : memref<4x1x128xf32, #tpu.memory_space<vmem>>, vector<1x1x128xf32>,
    %c0_i32_141 = arith.constant 0 : i32
    %288 = arith.cmpi eq, %arg2, %c0_i32_141 : i32
    %289 = arith.extui %288 : i1 to i32
    %c0_i32_142 = arith.constant 0 : i32
    %290 = arith.cmpi ne, %289, %c0_i32_142 : i32
    scf.if %290 {
      %c0_143 = arith.constant 0 : index
      %c0_144 = arith.constant 0 : index
      %c0_145 = arith.constant 0 : index
      %291 = vector.load %arg6[%c0_143, %c0_144, %c0_145] : memref<4x1x128xf32, #tpu.memory_space<vmem>>, vector<4x1x128xf32>
      %cst_146 = arith.constant dense<0.000000e+00> : vector<4x1xf32>
      %292 = vector.multi_reduction <add>, %291, %cst_146 [2] : vector<4x1x128xf32> to vector<4x1xf32>
      %cst_147 = arith.constant dense<0.000000e+00> : vector<4xf32>
      %293 = vector.multi_reduction <add>, %292, %cst_147 [1] : vector<4x1xf32> to vector<4xf32>
      %294 = vector.shape_cast %293 : vector<4xf32> to vector<4x1xf32>
      %c0_148 = arith.constant 0 : index
      %c0_149 = arith.constant 0 : index
      %c0_150 = arith.constant 0 : index
      %c0_151 = arith.constant 0 : index
      %c0_152 = arith.constant 0 : index
      %295 = vector.load %arg5[%c0_148, %c0_149, %c0_150, %c0_151, %c0_152] : memref<1x1x4x4x1xf32, #tpu.memory_space<vmem>>, vector<1x1x1x4x1xf32>
      %296 = vector.shape_cast %295 : vector<1x1x1x4x1xf32> to vector<4x1xf32>
      %297 = vector.shape_cast %294 : vector<4x1xf32> to vector<1x1x1x4x1xf32>
      tpu.vector_store %arg5[%c0_148, %c0_149, %c0_150, %c0_151, %c0_152], %297 {strides = array<i32>} : memref<1x1x4x4x1xf32, #tpu.memory_space<vmem>>, vector<1x1x1x4x1xf32>,
      %c0_153 = arith.constant 0 : index
      %c0_154 = arith.constant 0 : index
      %c0_155 = arith.constant 0 : index
      %298 = vector.load %arg7[%c0_153, %c0_154, %c0_155] : memref<4x1x128xf32, #tpu.memory_space<vmem>>, vector<4x1x128xf32>
      %cst_156 = arith.constant dense<0.000000e+00> : vector<4x1xf32>
      %299 = vector.multi_reduction <add>, %298, %cst_156 [2] : vector<4x1x128xf32> to vector<4x1xf32>
      %cst_157 = arith.constant dense<0.000000e+00> : vector<4xf32>
      %300 = vector.multi_reduction <add>, %299, %cst_157 [1] : vector<4x1xf32> to vector<4xf32>
      %301 = vector.shape_cast %300 : vector<4xf32> to vector<4x1xf32>
      %c0_158 = arith.constant 0 : index
      %c0_159 = arith.constant 0 : index
      %c1_160 = arith.constant 1 : index
      %c0_161 = arith.constant 0 : index
      %c0_162 = arith.constant 0 : index
      %302 = vector.load %arg5[%c0_158, %c0_159, %c1_160, %c0_161, %c0_162] : memref<1x1x4x4x1xf32, #tpu.memory_space<vmem>>, vector<1x1x1x4x1xf32>
      %303 = vector.shape_cast %302 : vector<1x1x1x4x1xf32> to vector<4x1xf32>
      %304 = vector.shape_cast %301 : vector<4x1xf32> to vector<1x1x1x4x1xf32>
      tpu.vector_store %arg5[%c0_158, %c0_159, %c1_160, %c0_161, %c0_162], %304 {strides = array<i32>} : memref<1x1x4x4x1xf32, #tpu.memory_space<vmem>>, vector<1x1x1x4x1xf32>,
      %c0_163 = arith.constant 0 : index
      %c0_164 = arith.constant 0 : index
      %c0_165 = arith.constant 0 : index
      %305 = vector.load %arg8[%c0_163, %c0_164, %c0_165] : memref<4x1x128xf32, #tpu.memory_space<vmem>>, vector<4x1x128xf32>
      %cst_166 = arith.constant dense<0.000000e+00> : vector<4x1xf32>
      %306 = vector.multi_reduction <add>, %305, %cst_166 [2] : vector<4x1x128xf32> to vector<4x1xf32>
      %cst_167 = arith.constant dense<0.000000e+00> : vector<4xf32>
      %307 = vector.multi_reduction <add>, %306, %cst_167 [1] : vector<4x1xf32> to vector<4xf32>
      %308 = vector.shape_cast %307 : vector<4xf32> to vector<4x1xf32>
      %c0_168 = arith.constant 0 : index
      %c0_169 = arith.constant 0 : index
      %c2_170 = arith.constant 2 : index
      %c0_171 = arith.constant 0 : index
      %c0_172 = arith.constant 0 : index
      %309 = vector.load %arg5[%c0_168, %c0_169, %c2_170, %c0_171, %c0_172] : memref<1x1x4x4x1xf32, #tpu.memory_space<vmem>>, vector<1x1x1x4x1xf32>
      %310 = vector.shape_cast %309 : vector<1x1x1x4x1xf32> to vector<4x1xf32>
      %311 = vector.shape_cast %308 : vector<4x1xf32> to vector<1x1x1x4x1xf32>
      tpu.vector_store %arg5[%c0_168, %c0_169, %c2_170, %c0_171, %c0_172], %311 {strides = array<i32>} : memref<1x1x4x4x1xf32, #tpu.memory_space<vmem>>, vector<1x1x1x4x1xf32>,
      %c0_173 = arith.constant 0 : index
      %c0_174 = arith.constant 0 : index
      %c0_175 = arith.constant 0 : index
      %312 = vector.load %arg9[%c0_173, %c0_174, %c0_175] : memref<4x1x128xf32, #tpu.memory_space<vmem>>, vector<4x1x128xf32>
      %cst_176 = arith.constant dense<0.000000e+00> : vector<4x1xf32>
      %313 = vector.multi_reduction <add>, %312, %cst_176 [2] : vector<4x1x128xf32> to vector<4x1xf32>
      %cst_177 = arith.constant dense<0.000000e+00> : vector<4xf32>
      %314 = vector.multi_reduction <add>, %313, %cst_177 [1] : vector<4x1xf32> to vector<4xf32>
      %315 = vector.shape_cast %314 : vector<4xf32> to vector<4x1xf32>
      %c0_178 = arith.constant 0 : index
      %c0_179 = arith.constant 0 : index
      %c3_180 = arith.constant 3 : index
      %c0_181 = arith.constant 0 : index
      %c0_182 = arith.constant 0 : index
      %316 = vector.load %arg5[%c0_178, %c0_179, %c3_180, %c0_181, %c0_182] : memref<1x1x4x4x1xf32, #tpu.memory_space<vmem>>, vector<1x1x1x4x1xf32>
      %317 = vector.shape_cast %316 : vector<1x1x1x4x1xf32> to vector<4x1xf32>
      %318 = vector.shape_cast %315 : vector<4x1xf32> to vector<1x1x1x4x1xf32>
      tpu.vector_store %arg5[%c0_178, %c0_179, %c3_180, %c0_181, %c0_182], %318 {strides = array<i32>} : memref<1x1x4x4x1xf32, #tpu.memory_space<vmem>>, vector<1x1x1x4x1xf32>,
    } else {
    }
    return
  }
  func.func @transform_0(%arg0: i32, %arg1: i32, %arg2: i32) -> (i32, i32, i32, i32, i32) {
    %c0_i32 = arith.constant 0 : i32
    %c0_i32_0 = arith.constant 0 : i32
    %c0_i32_1 = arith.constant 0 : i32
    return %arg0, %c0_i32, %arg1, %arg2, %c0_i32_0 : i32, i32, i32, i32, i32
  }
  func.func @transform_1(%arg0: i32, %arg1: i32, %arg2: i32) -> (i32, i32, i32, i32) {
    %c0_i32 = arith.constant 0 : i32
    %c0_i32_0 = arith.constant 0 : i32
    return %arg0, %arg1, %arg2, %c0_i32 : i32, i32, i32, i32
  }
  func.func @transform_2(%arg0: i32, %arg1: i32, %arg2: i32) -> (i32, i32, i32, i32, i32) {
    %c0_i32 = arith.constant 0 : i32
    %c0_i32_0 = arith.constant 0 : i32
    %c0_i32_1 = arith.constant 0 : i32
    %c0_i32_2 = arith.constant 0 : i32
    return %arg0, %arg1, %c0_i32, %c0_i32_0, %c0_i32_1 : i32, i32, i32, i32, i32
  }
}

</mosaic_0001>

<bundles_post_ra>
// kernel: tpu_custom_call.1
= control target key start
LH: loop header
LB: loop body
LE: loop exit
PB: predicated region body
PF: predicated region fallthrough
CT: control target
= control target key end

     0   :  { %7 = vsyncpa [#allocation7], 0  ;;  %s1410_s0 = inlined_call_operand.hbm [shape: f32[2,4,1,1,256], index: 0, kind: input, shape index: {}]   ;;  %s1411_s1 = inlined_call_operand.hbm [shape: s32[2,1,1,256], index: 1, kind: input, shape index: {}]   ;;  %s1412_s2 = inlined_call_operand.vmem [shape: f32[2,1,4,4,1], index: 2, kind: output, shape index: {}]  }
   0x1   :  { %9 = vsyncpa [#allocation7 + $0x1], 0 }
   0x2   :  { %10 = vsyncpa [#allocation9], 0 }
   0x3   :  { %12 = vsyncpa [#allocation9 + $0x1], 0  ;;  %s1071_s9 = smov 0   ;;  %s1073_s10 = smov 0  }
   0x4   :  { %s1075_s11 = smov 0   ;;  %s1077_s12 = smov 0  }
   0x5   :  { %s1079_s13 = smov 0   ;;  %s1081_s14 = smov 0  }
   0x6 LB: > { %s812_s15 = sadd.s32 4294967295, %s1049_s14   ;;  %s37_s16 = sadd.s32 1, %s1045_s13  ;;  %s1049_s14 = sphi %s1081_s14, %s18_s14   ;;  %s1045_s13 = sphi %s1079_s13, %s1427_s13   ;;  %s1041_s12 = sphi %s1077_s12, %s1426_s12   ;;  %s1037_s11 = sphi %s1075_s11, %s1425_s11   ;;  %s1033_s10 = sphi %s1073_s10, %s1424_s10   ;;  %s1029_s9 = sphi %s1071_s9, %s1423_s9  }
   0x7   : > { %p39_p0 = scmp.ge.s32.totalorder %s37_s16, 2  ;;  %s48_s17 = sadd.s32 1, %s1037_s11 }
   0x8   : > { %p55_p1 = scmp.ne.s32.totalorder %s1037_s11, %s1033_s10  ;;  %p56_p2 = scmp.eq.s32.totalorder %s1049_s14, 0 }
   0x9   : > { %s1429_s16 = smov (%p39_p0, %s37_s16), 0  ;;  %p61_p4 = scmp.ne.s32.totalorder %s1033_s10, %s1029_s9 }
   0xa   : > { %p1107_p3 = por %p56_p2, %p55_p1  ;;  %s41_s19 = ssub.s32 %s1045_s13, %s1429_s16 }
   0xb   : > { %p62_p5 = scmp.eq.s32.totalorder %s812_s15, 0  ;;  %p46_p6 = scmp.eq.s32.totalorder %s41_s19, 0 }
   0xc   : > { %p853_p8 = scmp.lt.s32.totalorder %s1049_s14, 2  ;;  %s1123_s22 = sand.u32 1, %s1037_s11  }
   0xd   : > { %p1114_p7 = por %p62_p5, %p61_p4  ;;  %s839_s23 = sshll.u32 %s1045_s13, 7 }
   0xe   : > { %s1120_s21 = scalar_select %p46_p6, %s1037_s11, %s48_s17  }
   0xf   : > { %s816_s24 = sshll.u32 %s1123_s22, 3  ;;  %s157_s27 = scalar_lea.hbm %s1410_s0, %s839_s23 }
  0x10   : > { %s147_s28 = scalar_lea.vmem [#allocation6], %s816_s24  ;;  %p1132_p9 = pnand %p853_p8, %p1107_p3 }
  0x11   : > { %s158_s29 = sshll.u32 %s147_s28, 4  ;;  %s144_s3 = scalar_lea.sflag [#allocation7], %s1123_s22  ;;  %s159_s29 = int_to_ptr.vmem [resolvable:$true] %s158_s29 }
  0x12   : > { %p941_p10 = pneg %p1132_p9  ;;  %s952_s4 = scalar_lea.vmem %s159_s29, 128 }
  0x13   : > { %p953_p11 = scmp.ne.s32.totalorder %s159_s29, %s952_s4  ;;  %s1051_s5 = smov [#allocation6]  }
  0x14   : > { %s957_s6 = sshll.u32 %s1051_s5, 4  ;;  %s958_s6 = int_to_ptr.vmem [resolvable:$false] %s957_s6 }
  0x15   : > { %p955_p12 = pnand %p953_p11, %p941_p10  ;;  %s959_s7 = scalar_lea.vmem %s958_s6, 256 }
  0x16   : > { %p960_p0 = scmp.lt.s32.totalorder %s159_s29, %s958_s6  ;;  %p961_p1 = scmp.lt.s32.totalorder %s959_s7, %s952_s4 }
  0x17   : > { %p956_p13 = pneg %p955_p12 }
  0x18   : > { %p962_p2 = por %p961_p1, %p960_p0 }
  0x1a   : > { %p963_p3 = pnand %p962_p2, %p956_p13 }
  0x1c   : > { %966 = shalt.err (!%p963_p3)
}
  0x1d   : > { %s1052_s8 = smov 32   ;;  %s1053_s9 = smov 2  }
  0x1e   : > { %849 = dma.hbm_to_vmem [thread:$0]  (!%p1132_p9), %s157_s27, 128, %s159_s29, %s144_s3, %s1052_s8, %s1052_s8, %s1053_s9  }
  0x1f   : > { %p822_p4 = scmp.ge.s32.totalorder %s1049_s14, 1  ;;  %p189_p5 = scmp.lt.s32.totalorder %s1049_s14, 3 }
  0x20   : > { %s819_s15 = sshll.u32 %s1123_s22, 1  ;;  %s840_s18 = sshll.u32 %s1045_s13, 5 }
  0x21   : > { %p1147_p6 = pnand %p822_p4, %p189_p5  ;;  %s172_s19 = scalar_lea.vmem [#allocation8], %s819_s15 }
  0x22   : > { %s184_s23 = sshll.u32 %s172_s19, 4  ;;  %s182_s26 = scalar_lea.hbm %s1411_s1, %s840_s18  ;;  %s185_s23 = int_to_ptr.vmem [resolvable:$true] %s184_s23 }
  0x23   : > { %s169_s28 = scalar_lea.sflag [#allocation9], %s1123_s22  ;;  %s980_s4 = scalar_lea.vmem %s185_s23, 32 }
  0x24   : > { %p981_p8 = scmp.ne.s32.totalorder %s185_s23, %s980_s4  ;;  %s1054_s27 = smov [#allocation8]  }
  0x25   : > { %s985_s29 = sshll.u32 %s1054_s27, 4  ;;  %s986_s29 = int_to_ptr.vmem [resolvable:$false] %s985_s29 }
  0x26   : > { %p983_p11 = pnand %p981_p8, %p941_p10  ;;  %s987_s3 = scalar_lea.vmem %s986_s29, 64 }
  0x27   : > { %p988_p13 = scmp.lt.s32.totalorder %s185_s23, %s986_s29  ;;  %p989_p0 = scmp.lt.s32.totalorder %s987_s3, %s980_s4 }
  0x28   : > { %p984_p12 = pneg %p983_p11 }
  0x29   : > { %p990_p1 = por %p989_p0, %p988_p13 }
  0x2b   : > { %p991_p2 = pnand %p990_p1, %p984_p12 }
  0x2d   : > { %994 = shalt.err (!%p991_p2)
}
  0x2e   : > { %852 = dma.hbm_to_vmem [thread:$0]  (!%p1132_p9), %s182_s26, 32, %s185_s23, %s169_s28  }
  0x2f   : > { %193 = sbr.rel (%p1147_p6) target bundleno = 289 (0x121), region = 28  ;;  %s195_s22 = sand.u32 (!%p1147_p6), 1, %s1033_s10  }
  0x30   : > { %s823_s5 = sshll.u32 (!%p1147_p6), %s195_s22, 3  ;;  %s196_s6 = scalar_lea.sflag (!%p1147_p6), [#allocation7], %s195_s22 }
  0x31   : > { %s1164_s7 = scalar_lea.vmem (!%p1147_p6), [#allocation6], %s823_s5 }
  0x34   : > { %1020 = dma.done.wait (%p1114_p7), %s196_s6, 128  }
  0x35   : > { %1022 = vsyncadd (%p1114_p7), %s196_s6, 4294967168  ;;  %s824_s8 = sshll.u32 %s195_s22, 1  ;;  %s205_s9 = scalar_lea.sflag [#allocation9], %s195_s22 }
  0x36   : > { %s208_s30 = scalar_lea.vmem [#allocation8], %s824_s8 }
  0x37   : > { %1024 = dma.done.wait (%p1114_p7), %s205_s9, 32  }
  0x38   : > { %1026 = vsyncadd (%p1114_p7), %s205_s9, 4294967264  ;;  %v1055_v0 = vmov 0.0   ;;  %v1190_v1 = vld [vmem:[%s208_s30] sm:$0x3]  ;;  %v1193_v2 = vld [vmem:[%s1164_s7 + $0x4] sm:$0x3] }
  0x39   : > { %261 = vst [vmem:[#allocation4 + $0x2] sm:$0x1] %v1055_v0  ;;  %251 = vst [vmem:[#allocation2] sm:$0x1] %v1055_v0  ;;  %v1196_v3 = vld [vmem:[%s1164_s7] sm:$0x3] }
  0x3a   : > { %252 = vst [vmem:[#allocation2 + $0x1] sm:$0x1] %v1055_v0  ;;  %253 = vst [vmem:[#allocation2 + $0x2] sm:$0x1] %v1055_v0  ;;  %vm417_vm0 = vcmp.eq.s32.totalorder %v1190_v1, 2  ;;  %vm354_vm1 = vcmp.eq.s32.totalorder %v1190_v1, 1 }
  0x3b   : > { %254 = vst [vmem:[#allocation2 + $0x3] sm:$0x1] %v1055_v0  ;;  %255 = vst [vmem:[#allocation3] sm:$0x1] %v1055_v0  ;;  %v420_v4 = vand.u32 2147483647, %v1193_v2 }
  0x3c   : > { %256 = vst [vmem:[#allocation3 + $0x1] sm:$0x1] %v1055_v0  ;;  %257 = vst [vmem:[#allocation3 + $0x2] sm:$0x1] %v1055_v0  ;;  %v1204_v5 = vsel %vm417_vm0, 1.0, %v1055_v0  ;;  %v1212_v7 = vsel %vm354_vm1, 1.0, %v1055_v0 }
  0x3d   : > { %258 = vst [vmem:[#allocation3 + $0x3] sm:$0x1] %v1055_v0  ;;  %259 = vst [vmem:[#allocation4] sm:$0x1] %v1055_v0  ;;  %v1207_v6 = vld [vmem:[%s1164_s7 + $0x2] sm:$0x3]  ;;  %v425_v63 = vmul.f32 %v1204_v5, %v1193_v2 }
  0x3e   : > { %260 = vst [vmem:[#allocation4 + $0x1] sm:$0x1] %v1055_v0  ;;  %262 = vst [vmem:[#allocation4 + $0x3] sm:$0x1] %v1055_v0  ;;  %v421_v8 = vsub.f32 0.0, %v420_v4  ;;  %v466_v10 = vrot.slane %v1204_v5, 1  ;;  %v275_v12 = vmax.f32 %v1196_v3, %v1207_v6  ;;  %v362_v58 = vmul.f32 %v1212_v7, %v1207_v6 }
  0x3f   : > { %263 = vst [vmem:[#allocation5] sm:$0x1] %v1055_v0  ;;  %264 = vst [vmem:[#allocation5 + $0x1] sm:$0x1] %v1055_v0  ;;  %v1216_v11 = vld [vmem:[%s1164_s7 + $0x6] sm:$0x3] }
  0x40   : > { %265 = vst [vmem:[#allocation5 + $0x2] sm:$0x1] %v1055_v0  ;;  %266 = vst [vmem:[#allocation5 + $0x3] sm:$0x1] %v1055_v0  ;;  %v464_v9 = vld [vmem:[#allocation4 + $0x2] sm:$0x1]  ;;  %v468_v17 = vadd.f32 %v1204_v5, %v466_v10  ;;  %v276_v18 = vmax.f32 %v275_v12, %v1193_v2 }
  0x41   : > { %v298_v13 = vand.u32 2147483647, %v1196_v3  ;;  %v357_v14 = vand.u32 2147483647, %v1207_v6  ;;  %v403_v15 = vrot.slane %v1212_v7, 1  ;;  %vm480_vm2 = vcmp.eq.s32.totalorder %v1190_v1, 3 }
  0x42   : > { %v422_v16 = vmul.f32 1.442695, %v421_v8  ;;  %v483_v20 = vand.u32 2147483647, %v1216_v11  ;;  %v469_v24 = vadd.f32 %v468_v17, %v464_v9  ;;  %v277_v25 = vmax.f32 %v276_v18, %v1216_v11  ;;  %p238_p7 = scmp.lt.s32.totalorder %s1041_s12, 1 }
  0x43   : > { %v299_v21 = vsub.f32 0.0, %v298_v13  ;;  %v358_v22 = vsub.f32 0.0, %v357_v14  ;;  %v405_v23 = vadd.f32 %v1212_v7, %v403_v15  ;;  %v1232_v30 = vsel %vm480_vm2, 1.0, %v1055_v0 }
  0x44   : > { %905 = vpow2.f32 %v422_v16  ;;  %v484_v26 = vsub.f32 0.0, %v483_v20  ;;  %470 = vst [vmem:[#allocation4 + $0x2] sm:$0x1] %v469_v24  ;;  %v278_v31 = vsub.f32 %v1196_v3, %v277_v25  ;;  %v284_v32 = vsub.f32 %v1193_v2, %v277_v25  ;;  %v339_v44 = vld [vmem:[#allocation4] sm:$0x1]  ;;  %s1431_s12 = smov (!%p238_p7, %s1041_s12), 1 }
  0x45   : > { %v401_v19 = vld [vmem:[#allocation4 + $0x1] sm:$0x1]  ;;  %v300_v27 = vmul.f32 1.442695, %v299_v21  ;;  %v359_v28 = vmul.f32 1.442695, %v358_v22  ;;  %v287_v36 = vsub.f32 %v1216_v11, %v277_v25  ;;  %v281_v42 = vsub.f32 %v1207_v6, %v277_v25 }
  0x46   : > { %v406_v29 = vadd.f32 %v405_v23, %v401_v19  ;;  %v485_v33 = vmul.f32 1.442695, %v484_v26  ;;  %v529_v34 = vrot.slane %v1232_v30, 1  ;;  %vm295_vm3 = vcmp.eq.s32.totalorder %v1190_v1, 0  ;;  %v527_v37 = vld [vmem:[#allocation4 + $0x3] sm:$0x1] }
  0x47   : > { %907 = vpow2.f32 %v300_v27  ;;  %v279_v35 = vmul.f32 1.442695, %v278_v31  ;;  %v285_v38 = vmul.f32 1.442695, %v284_v32  ;;  %v1243_v40 = vsel %vm295_vm3, 1.0, %v1055_v0  ;;  %s841_s20 = sshll.u32 %s1431_s12, 4 }
  0x48   : > { %407 = vst [vmem:[#allocation4 + $0x1] sm:$0x1] %v406_v29  ;;  %909 = vpow2.f32 %v359_v28  ;;  %v531_v39 = vadd.f32 %v1232_v30, %v529_v34  ;;  %v341_v41 = vrot.slane %v1243_v40, 1  ;;  %vm549_vm4 = vcmask 1040384   ;;  %s1370_s18 = scalar_lea.vmem %s1412_s2, %s841_s20 }
  0x49   : > { %911 = vpow2.f32 %v485_v33  ;;  %v288_v45 = vmul.f32 1.442695, %v287_v36  ;;  %v282_v47 = vmul.f32 1.442695, %v281_v42  ;;  %v361_v60 = vmax.f32 %v1207_v6, 0.0 }
  0x4a   : > { %v532_v43 = vadd.f32 %v531_v39, %v527_v37  ;;  %913 = vpow2.f32 %v279_v35  ;;  %v343_v46 = vadd.f32 %v1243_v40, %v341_v41  ;;  %v424_v4 = vmax.f32 %v1193_v2, 0.0 }
  0x4b   : > { %v617_v48 = vld [vmem:[#allocation4 + $0x2] sm:$0x1]  ;;  %915 = vpow2.f32 %v285_v38  ;;  %v1269_v14 = vsub.f32 %v361_v60, %v362_v58  ;;  %vm374_vm5 = vcmp.ge.f32.partialorder %v1207_v6, 0.0  ;;  %vm437_vm6 = vcmp.ge.f32.partialorder %v1193_v2, 0.0 }
  0x4c   : > { %533 = vst [vmem:[#allocation4 + $0x3] sm:$0x1] %v532_v43  ;;  %v625_v49 = vsel %vm549_vm4, %v617_v48, 0.0  ;;  %v344_v51 = vadd.f32 %v343_v46, %v339_v44  ;;  %917 = vpow2.f32 %v282_v47  ;;  %v487_v16 = vmax.f32 %v1216_v11, 0.0 }
  0x4d   : > { %626 = vadd.xlane.f32.xlu0 %v625_v49  ;;  %919 = vpow2.f32 %v288_v45  ;;  %v426_v18 = vsub.f32 %v424_v4, %v425_v63  ;;  %v488_v20 = vmul.f32 %v1232_v30, %v1216_v11  ;;  %vm500_vm7 = vcmp.ge.f32.partialorder %v1216_v11, 0.0 }
  0x4e   : > { %345 = vst [vmem:[#allocation4] sm:$0x1] %v344_v51  ;;  %v302_v29 = vmax.f32 %v1196_v3, 0.0  ;;  %v303_v32 = vmul.f32 %v1243_v40, %v1196_v3  ;;  %vm315_vm8 = vcmp.ge.f32.partialorder %v1196_v3, 0.0  ;;  %vm571_vm13 = vcmask 1041409  }
  0x4f   : > { %v616_v50 = vld [vmem:[#allocation4 + $0x1] sm:$0x1]  ;;  %v489_v31 = vsub.f32 %v487_v16, %v488_v20  ;;  %vm574_vm14 = vcmask 1042434   ;;  %vm577_vm15 = vcmask 1043459  }
  0x50   : > { %v622_v52 = vsel %vm549_vm4, %v616_v50, 0.0 }
  0x51   : > { %623 = vadd.xlane.f32.xlu1 %v622_v52  ;;  %v906_v53 = vpop.eup %905 }
  0x52   : > { %v427_v54 = vadd.f32 1.0, %v906_v53  ;;  %v430_v10 = vmul.f32 -0.5, %v906_v53  ;;  %v433_v19 = vand.u32 2147483647, %v906_v53  ;;  %v438_v25 = vsel %vm437_vm6, %v906_v53, 1.0 }
  0x53   : > { %v618_v56 = vld [vmem:[#allocation4 + $0x3] sm:$0x1]  ;;  %v439_v26 = vsel %vm437_vm6, 1.0, %v906_v53 }
  0x54   : > { %v1250_v55 = vpop.eup %907  ;;  %921 = vlog2.f32 %v427_v54  ;;  %v628_v59 = vsel %vm549_vm4, %v618_v56, 0.0  ;;  %v431_v23 = vadd.f32 1.0, %v430_v10  ;;  %v440_v37 = vsel %vm417_vm0, %v438_v25, %v439_v26 }
  0x55   : > { %v1252_v57 = vpop.eup %909  ;;  %923 = vrcp.f32 %v427_v54  ;;  %629 = vadd.xlane.f32.xlu1 %v628_v59  ;;  %v615_v0 = vld [vmem:[#allocation4] sm:$0x1]  ;;  %v305_v12 = vadd.f32 1.0, %v1250_v55  ;;  %v308_v33 = vmul.f32 -0.5, %v1250_v55  ;;  %vm434_vm10 = vcmp.lt.f32.partialorder %v433_v19, 0.0004427343 }
  0x56   : > { %v1258_v61 = vpop.eup %911  ;;  %v364_v62 = vadd.f32 1.0, %v1252_v57  ;;  %v619_v9 = vsel %vm549_vm4, %v615_v0, 0.0  ;;  %v367_v21 = vmul.f32 -0.5, %v1252_v57  ;;  %v370_v2 = vand.u32 2147483647, %v1252_v57 }
  0x57   : > { %v490_v8 = vadd.f32 1.0, %v1258_v61  ;;  %v1267_v13 = vpop.eup %913  ;;  %620 = vadd.xlane.f32.xlu0 %v619_v9  ;;  %v493_v28 = vmul.f32 -0.5, %v1258_v61  ;;  %v432_v36 = vmul.f32 %v906_v53, %v431_v23  ;;  %v375_v41 = vsel %vm374_vm5, %v1252_v57, 1.0 }
  0x58   : > { %925 = vlog2.f32 %v364_v62  ;;  %v1271_v15 = vpop.eup %915  ;;  %v368_v34 = vadd.f32 1.0, %v367_v21  ;;  %vm1297_vm9 = vcmp.lt.f32.partialorder %v370_v2, 0.0004427343  ;;  %v376_v42 = vsel %vm374_vm5, 1.0, %v1252_v57 }
  0x59   : > { %927 = vrcp.f32 %v364_v62  ;;  %v1276_v17 = vpop.eup %917  ;;  %v494_v45 = vadd.f32 1.0, %v493_v28  ;;  %v496_v46 = vand.u32 2147483647, %v1258_v61  ;;  %v501_v48 = vsel %vm500_vm7, %v1258_v61, 1.0 }
  0x5a   : > { %929 = vlog2.f32 %v490_v8  ;;  %v290_v22 = vadd.f32 %v1276_v17, %v1267_v13  ;;  %v1283_v24 = vpop.eup %919  ;;  %v502_v49 = vsel %vm500_vm7, 1.0, %v1258_v61  ;;  %v309_v50 = vadd.f32 1.0, %v308_v33 }
  0x5b   : > { %931 = vrcp.f32 %v490_v8  ;;  %v369_v6 = vmul.f32 %v1252_v57, %v368_v34  ;;  %v377_v51 = vsel %vm354_vm1, %v375_v41, %v376_v42  ;;  %v311_v53 = vand.u32 2147483647, %v1250_v55 }
  0x5c   : > { %933 = vlog2.f32 %v305_v12  ;;  %v291_v27 = vadd.f32 %v1271_v15, %v290_v22  ;;  %v316_v59 = vsel %vm315_vm8, %v1250_v55, 1.0  ;;  %v317_v11 = vsel %vm315_vm8, 1.0, %v1250_v55 }
  0x5d   : > { %935 = vrcp.f32 %v305_v12  ;;  %v495_v57 = vmul.f32 %v1258_v61, %v494_v45  ;;  %v503_v63 = vsel %vm480_vm2, %v501_v48, %v502_v49  ;;  %v304_v0 = vsub.f32 %v302_v29, %v303_v32  ;;  %v324_v61 = vld [vmem:[#allocation2] sm:$0x1] }
  0x5e   : > { %v292_v35 = vadd.f32 %v1283_v24, %v291_v27  ;;  %vm1327_vm11 = vcmp.lt.f32.partialorder %v496_v46, 0.0004427343  ;;  %v310_v12 = vmul.f32 %v1250_v55, %v309_v50  ;;  %vm1334_vm12 = vcmp.lt.f32.partialorder %v311_v53, 0.0004427343  ;;  %v472_v55 = vld [vmem:[#allocation5 + $0x2] sm:$0x1] }
  0x5f   : > { %v318_v19 = vsel %vm295_vm3, %v316_v59, %v317_v11  ;;  %v393_v50 = vld [vmem:[#allocation3 + $0x1] sm:$0x1]  ;;  %vm580_vm0 = vcmask 3072  }
  0x60   : > { %937 = vrcp.f32 %v292_v35 }
  0x61   : > { %v922_v38 = vpop.eup %921 }
  0x62   : > { %v924_v43 = vpop.eup %923  ;;  %v429_v44 = vmul.f32 0.6931472, %v922_v38  ;;  %v409_v38 = vld [vmem:[#allocation5 + $0x1] sm:$0x1] }
  0x63   : > { %v443_v47 = vmul.f32 %v924_v43, %v440_v37 }
  0x64   : > { %v435_v52 = vsel %vm434_vm10, %v432_v36, %v429_v44 }
  0x65   : > { %v926_v54 = vpop.eup %925  ;;  %v436_v56 = vadd.f32 %v435_v52, %v426_v18  ;;  %v444_v58 = vmul.f32 %v443_v47, %v443_v47 }
  0x66   : > { %v928_v60 = vpop.eup %927  ;;  %v366_v62 = vmul.f32 0.6931472, %v926_v54  ;;  %v332_v54 = vld [vmem:[#allocation3] sm:$0x1] }
  0x67   : > { %v930_v4 = vpop.eup %929  ;;  %v380_v8 = vmul.f32 %v928_v60, %v377_v51  ;;  %v445_v9 = vmul.f32 %v444_v58, %v436_v56  ;;  %v456_v56 = vld [vmem:[#allocation3 + $0x2] sm:$0x1]  ;;  %v384_v60 = vld [vmem:[#allocation2 + $0x1] sm:$0x1] }
  0x68   : > { %v932_v16 = vpop.eup %931  ;;  %v372_v3 = vsel %vm1297_vm9, %v369_v6, %v366_v62  ;;  %v492_v18 = vmul.f32 0.6931472, %v930_v4 }
  0x69   : > { %v934_v20 = vpop.eup %933  ;;  %v373_v21 = vadd.f32 %v372_v3, %v1269_v14  ;;  %v381_v22 = vmul.f32 %v380_v8, %v380_v8  ;;  %v474_v23 = vrot.slane %v445_v9, 1  ;;  %v506_v2 = vmul.f32 %v932_v16, %v503_v63  ;;  %v535_v8 = vld [vmem:[#allocation5 + $0x3] sm:$0x1]  ;;  %v510_v3 = vld [vmem:[#allocation2 + $0x3] sm:$0x1] }
  0x6a   : > { %v936_v25 = vpop.eup %935  ;;  %v498_v26 = vsel %vm1327_vm11, %v495_v57, %v492_v18  ;;  %v307_v27 = vmul.f32 0.6931472, %v934_v20  ;;  %v519_v57 = vld [vmem:[#allocation3 + $0x3] sm:$0x1] }
  0x6b   : > { %v382_v28 = vmul.f32 %v381_v22, %v373_v21  ;;  %v476_v29 = vadd.f32 %v474_v23, %v445_v9  ;;  %v499_v32 = vadd.f32 %v498_v26, %v489_v31  ;;  %v507_v33 = vmul.f32 %v506_v2, %v506_v2 }
  0x6c   : > { %v313_v1 = vsel %vm1334_vm12, %v310_v12, %v307_v27  ;;  %v321_v34 = vmul.f32 %v936_v25, %v318_v19  ;;  %v346_v25 = vld [vmem:[#allocation5] sm:$0x1] }
  0x6d   : > { %v411_v35 = vrot.slane %v382_v28, 1  ;;  %v477_v36 = vadd.f32 %v476_v29, %v472_v55  ;;  %v508_v14 = vmul.f32 %v507_v33, %v499_v32  ;;  %v314_v37 = vadd.f32 %v313_v1, %v304_v0  ;;  %v938_v41 = vpop.eup %937 }
  0x6e   : > { %v322_v39 = vmul.f32 %v321_v34, %v321_v34  ;;  %v353_v44 = vmul.f32 %v938_v41, %v1276_v17  ;;  %v294_v45 = vmul.f32 %v938_v41, %v1267_v13  ;;  %v416_v31 = vmul.f32 %v938_v41, %v1271_v15 }
  0x6f   : > { %v413_v42 = vadd.f32 %v411_v35, %v382_v28  ;;  %478 = vst [vmem:[#allocation5 + $0x2] sm:$0x1] %v477_v36  ;;  %v537_v43 = vrot.slane %v508_v14, 1  ;;  %v479_v46 = vmul.f32 %v938_v41, %v1283_v24 }
  0x70   : > { %v323_v49 = vmul.f32 %v322_v39, %v314_v37  ;;  %v395_v6 = vrot.slane %v353_v44, 1  ;;  %v334_v51 = vrot.slane %v294_v45, 1  ;;  %v458_v52 = vrot.slane %v416_v31, 1 }
  0x71   : > { %v414_v47 = vadd.f32 %v413_v42, %v409_v38  ;;  %v539_v48 = vadd.f32 %v537_v43, %v508_v14  ;;  %v385_v53 = vmul.f32 %v1212_v7, %v353_v44  ;;  %v521_v58 = vrot.slane %v479_v46, 1 }
  0x72   : > { %v448_v17 = vmul.f32 %v1204_v5, %v416_v31  ;;  %v511_v13 = vmul.f32 %v1232_v30, %v479_v46  ;;  %v325_v15 = vmul.f32 %v1243_v40, %v294_v45  ;;  %v397_v24 = vadd.f32 %v395_v6, %v353_v44  ;;  %v447_v5 = vld [vmem:[#allocation2 + $0x2] sm:$0x1] }
  0x73   : > { %415 = vst [vmem:[#allocation5 + $0x1] sm:$0x1] %v414_v47  ;;  %v336_v59 = vadd.f32 %v334_v51, %v294_v45  ;;  %v460_v11 = vadd.f32 %v458_v52, %v416_v31  ;;  %v387_v62 = vrot.slane %v385_v53, 1  ;;  %v523_v63 = vadd.f32 %v521_v58, %v479_v46 }
  0x74   : > { %v450_v0 = vrot.slane %v448_v17, 1  ;;  %v513_v4 = vrot.slane %v511_v13, 1  ;;  %v327_v7 = vrot.slane %v325_v15, 1  ;;  %v398_v9 = vadd.f32 %v397_v24, %v393_v50 }
  0x75   : > { %v337_v10 = vadd.f32 %v336_v59, %v332_v54  ;;  %v461_v12 = vadd.f32 %v460_v11, %v456_v56  ;;  %v389_v16 = vadd.f32 %v387_v62, %v385_v53  ;;  %v524_v30 = vadd.f32 %v523_v63, %v519_v57 }
  0x76   : > { %v452_v18 = vadd.f32 %v450_v0, %v448_v17  ;;  %v515_v40 = vadd.f32 %v513_v4, %v511_v13  ;;  %399 = vst [vmem:[#allocation3 + $0x1] sm:$0x1] %v398_v9  ;;  %v329_v20 = vadd.f32 %v327_v7, %v325_v15  ;;  %v540_v21 = vadd.f32 %v539_v48, %v535_v8  ;;  %v650_v26 = vld [vmem:[#allocation5 + $0x2] sm:$0x1] }
  0x77   : > { %338 = vst [vmem:[#allocation3] sm:$0x1] %v337_v10  ;;  %462 = vst [vmem:[#allocation3 + $0x2] sm:$0x1] %v461_v12  ;;  %v390_v19 = vadd.f32 %v389_v16, %v384_v60  ;;  %v348_v22 = vrot.slane %v323_v49, 1  ;;  %v658_v33 = vsel %vm549_vm4, %v650_v26, 0.0 }
  0x78   : > { %525 = vst [vmem:[#allocation3 + $0x3] sm:$0x1] %v524_v30  ;;  %v453_v23 = vadd.f32 %v452_v18, %v447_v5  ;;  %v516_v2 = vadd.f32 %v515_v40, %v510_v3  ;;  %v330_v27 = vadd.f32 %v329_v20, %v324_v61  ;;  %541 = vst [vmem:[#allocation5 + $0x3] sm:$0x1] %v540_v21 }
  0x79   : > { %391 = vst [vmem:[#allocation2 + $0x1] sm:$0x1] %v390_v19  ;;  %v350_v28 = vadd.f32 %v348_v22, %v323_v49 }
  0x7a   : > { %v649_v55 = vld [vmem:[#allocation5 + $0x1] sm:$0x1]  ;;  %454 = vst [vmem:[#allocation2 + $0x2] sm:$0x1] %v453_v23  ;;  %517 = vst [vmem:[#allocation2 + $0x3] sm:$0x1] %v516_v2 }
  0x7b   : > { %v655_v29 = vsel %vm549_vm4, %v649_v55, 0.0  ;;  %331 = vst [vmem:[#allocation2] sm:$0x1] %v330_v27  ;;  %v351_v32 = vadd.f32 %v350_v28, %v346_v25 }
  0x7c   : > { %656 = vadd.xlane.f32.xlu1 %v655_v29 }
  0x7d   : > { %352 = vst [vmem:[#allocation5] sm:$0x1] %v351_v32  ;;  %v583_v1 = vld [vmem:[#allocation3 + $0x1] sm:$0x1] }
  0x7e   : > { %v582_v34 = vld [vmem:[#allocation3] sm:$0x1]  ;;  %v584_v35 = vld [vmem:[#allocation3 + $0x2] sm:$0x1]  ;;  %v589_v36 = vsel %vm549_vm4, %v583_v1, 0.0 }
  0x7f   : > { %590 = vadd.xlane.f32.xlu0 %v589_v36  ;;  %v592_v14 = vsel %vm549_vm4, %v584_v35, 0.0  ;;  %v586_v37 = vsel %vm549_vm4, %v582_v34, 0.0  ;;  %v585_v38 = vld [vmem:[#allocation3 + $0x3] sm:$0x1]  ;;  %v651_v46 = vld [vmem:[#allocation5 + $0x3] sm:$0x1] }
  0x80   : > { %659 = vadd.xlane.f32.xlu1 %v658_v33  ;;  %v546_v39 = vld [vmem:[#allocation2 + $0x1] sm:$0x1]  ;;  %v595_v41 = vsel %vm549_vm4, %v585_v38, 0.0  ;;  %v661_v48 = vsel %vm549_vm4, %v651_v46, 0.0 }
  0x81   : > { %v553_v42 = vsel %vm549_vm4, %v546_v39, 0.0  ;;  %v548_v43 = vld [vmem:[#allocation2 + $0x3] sm:$0x1]  ;;  %v547_v44 = vld [vmem:[#allocation2 + $0x2] sm:$0x1] }
  0x82   : > { %v559_v45 = vsel %vm549_vm4, %v548_v43, 0.0  ;;  %v556_v31 = vsel %vm549_vm4, %v547_v44, 0.0  ;;  %v545_v47 = vld [vmem:[#allocation2] sm:$0x1] }
  0x83   : > { %587 = vadd.xlane.f32.xlu0 %v586_v37  ;;  %v550_v49 = vsel %vm549_vm4, %v545_v47, 0.0 }
  0x84   : > { %593 = vadd.xlane.f32.xlu1 %v592_v14  ;;  %v648_v50 = vld [vmem:[#allocation5] sm:$0x1] }
  0x85   : > { %v652_v6 = vsel %vm549_vm4, %v648_v50, 0.0 }
  0x87   : > { %554 = vadd.xlane.f32.xlu0 %v553_v42 }
  0x88   : > { %596 = vadd.xlane.f32.xlu1 %v595_v41 }
  0x8b   : > { %557 = vadd.xlane.f32.xlu0 %v556_v31 }
  0x8c   : > { %560 = vadd.xlane.f32.xlu1 %v559_v45 }
  0x8f   : > { %551 = vadd.xlane.f32.xlu0 %v550_v49 }
  0x90   : > { %662 = vadd.xlane.f32.xlu1 %v661_v48 }
  0x93   : > { %653 = vadd.xlane.f32.xlu0 %v652_v6 }
  0xd6   : > { %v627_v52 = vpop.xlane.xlu0 %626 }
  0xd7   : > { %v641_v56 = vrot.slane %v627_v52, 6 }
  0xda   : > { %v624_v51 = vpop.xlane.xlu1 %623 }
  0xdb   : > { %v639_v53 = vrot.slane %v624_v51, 7 }
  0xde   : > { %v630_v54 = vpop.xlane.xlu1 %629 }
  0xdf   : > { %v643_v58 = vrot.slane %v630_v54, 5 }
  0xe0   : > { %v621_v17 = vpop.xlane.xlu0 %620 }
  0xe1   : > { %v640_v13 = vsel %vm571_vm13, %v639_v53, %v621_v17 }
  0xe2   : > { %v642_v15 = vsel %vm574_vm14, %v641_v56, %v640_v13 }
  0xe3   : > { %v644_v24 = vsel %vm577_vm15, %v643_v58, %v642_v15 }
  0xe4   : > { %835 = vst.msk [vmem:[%s1370_s18 + $0x8] sm:$0xf] %vm580_vm0, %v644_v24 }
 0x105   : > { %v657_v59 = vpop.xlane.xlu1 %656 }
 0x106   : > { %v672_v21 = vrot.slane %v657_v59, 7 }
 0x108   : > { %v591_v60 = vpop.xlane.xlu0 %590 }
 0x109   : > { %v660_v11 = vpop.xlane.xlu1 %659  ;;  %v606_v0 = vrot.slane %v591_v60, 7 }
 0x10a   : > { %v674_v2 = vrot.slane %v660_v11, 6 }
 0x10c   : > { %v588_v57 = vpop.xlane.xlu0 %587 }
 0x10d   : > { %v594_v62 = vpop.xlane.xlu1 %593  ;;  %v607_v7 = vsel %vm571_vm13, %v606_v0, %v588_v57 }
 0x10e   : > { %v608_v63 = vrot.slane %v594_v62, 6 }
 0x110   : > { %v555_v8 = vpop.xlane.xlu0 %554  ;;  %v609_v10 = vsel %vm574_vm14, %v608_v63, %v607_v7 }
 0x111   : > { %v597_v4 = vpop.xlane.xlu1 %596  ;;  %v570_v3 = vrot.slane %v555_v8, 7 }
 0x112   : > { %v610_v9 = vrot.slane %v597_v4, 5 }
 0x114   : > { %v611_v12 = vsel %vm577_vm15, %v610_v9, %v609_v10  ;;  %v558_v5 = vpop.xlane.xlu0 %557 }
 0x115   : > { %834 = vst.msk [vmem:[%s1370_s18 + $0x4] sm:$0xf] %vm580_vm0, %v611_v12  ;;  %v561_v16 = vpop.xlane.xlu1 %560  ;;  %v573_v18 = vrot.slane %v558_v5, 6 }
 0x116   : > { %v576_v30 = vrot.slane %v561_v16, 5 }
 0x118   : > { %v552_v40 = vpop.xlane.xlu0 %551 }
 0x119   : > { %v663_v61 = vpop.xlane.xlu1 %662  ;;  %v572_v19 = vsel %vm571_vm13, %v570_v3, %v552_v40 }
 0x11a   : > { %v575_v20 = vsel %vm574_vm14, %v573_v18, %v572_v19  ;;  %v676_v23 = vrot.slane %v663_v61, 5 }
 0x11b   : > { %v578_v22 = vsel %vm577_vm15, %v576_v30, %v575_v20 }
 0x11c   : > { %581 = vst.msk [vmem:[%s1370_s18] sm:$0xf] %vm580_vm0, %v578_v22  ;;  %v654_v25 = vpop.xlane.xlu0 %653 }
 0x11d   : > { %v673_v55 = vsel %vm571_vm13, %v672_v21, %v654_v25 }
 0x11e   : > { %v675_v26 = vsel %vm574_vm14, %v674_v2, %v673_v55 }
 0x11f   : > { %v677_v27 = vsel %vm577_vm15, %v676_v23, %v675_v26 }
 0x120   : > { %836 = vst.msk [vmem:[%s1370_s18 + $0xc] sm:$0xf] %vm580_vm0, %v677_v27 }
 0x121 PF: > { %s18_s14 = sadd.s32 1, %s1049_s14   ;;  %s1423_s9 = smov %s1033_s10 }
 0x122   : > { %p15_p9 = scmp.ge.s32.totalorder %s18_s14, 4   ;;  %s1424_s10 = smov %s1037_s11 }
 0x123   : > { %s1425_s11 = smov %s1120_s21  ;;  %s1426_s12 = smov %s1045_s13 }
 0x124   : > { %s1427_s13 = smov %s1429_s16  ;;  %17 = sbr.rel (!%p15_p9) target bundleno = 6 (0x6), region = 107 }
 0x129   :  { %710 = vsyncpa [#allocation7], 1 }
 0x12a   :  { %712 = vsyncpa [#allocation7 + $0x1], 1 }
 0x12b   :  { %713 = vsyncpa [#allocation9], 1 }
 0x12c   :  { %715 = vsyncpa [#allocation9 + $0x1], 1 }

</bundles_post_ra>
